<compile_context>
chip_gen: v5e
topology: v5e:2x2
jax: 0.10.0
libtpu: 0.0.40
codegen_flags: <defaults>
</compile_context>

<pallas_src>
import jax
import jax.numpy as jnp
from jax.experimental import pallas as pl
from jax.experimental.pallas import tpu as pltpu

# ----------------------------- config (args) ---------------------------------
BATCH = 2          # per-device batch
C_IN = 3           # image channels
H = W = 16         # spatial
FEAT = 32          # encoder hidden width (stand-in for the 512-d backbone)
NUM_CLASS = 4      # args.num_class
LOW_DIM = 8        # args.low_dim
MOCO_QUEUE = 8     # args.moco_queue (divisible by BATCH)
PROTO_M = 0.99     # args.proto_m
MOCO_M = 0.999     # args.moco_m
EPS = 1e-12        # F.normalize eps

# lane / contraction padding (zero padded -> numerically identical)
K_RAW = C_IN * 9            # 27 im2col taps
K_PAD = 32                  # padded contraction dim
FEAT_PAD = 128              # hidden width padded to full lane width
HEAD_PAD = 128              # packed head: proj in lanes 0:LOW_DIM, cls in LOW_DIM:LOW_DIM+NUM_CLASS
ROWS_PER_VIEW = BATCH * H * W


# ----------------------------- fused Pallas kernel ----------------------------
def fused_kernel(ptr_ref, patches_ref,
                 wq_conv_ref, bq_conv_ref, wq_head_ref, bq_head_ref,
                 wk_conv_ref, bk_conv_ref, wk_head_ref, bk_head_ref,
                 py_ref, proto_ref, queue_ref, qpseudo_ref, qpartial_ref,
                 main_ref, proto_out_ref, queue_out_ref, qpseudo_out_ref,
                 qpartial_out_ref, wk_conv_out_ref, bk_conv_out_ref,
                 wk_head_out_ref, bk_head_out_ref):
    """q/k encoder passes + PLL stats + prototype update + queue enqueue."""

    # ---- momentum update of the key encoder (used below by the k pass) ------
    wk_conv = wk_conv_ref[...] * MOCO_M + wq_conv_ref[...] * (1.0 - MOCO_M)
    bk_conv = bk_conv_ref[...] * MOCO_M + bq_conv_ref[...] * (1.0 - MOCO_M)
    wk_head = wk_head_ref[...] * MOCO_M + wq_head_ref[...] * (1.0 - MOCO_M)
    bk_head = bk_head_ref[...] * MOCO_M + bq_head_ref[...] * (1.0 - MOCO_M)
    wk_conv_out_ref[...] = wk_conv
    bk_conv_out_ref[...] = bk_conv
    wk_head_out_ref[...] = wk_head
    bk_head_out_ref[...] = bk_head

    # ---- conv (one K=32 bf16 matmul) + ReLU + global average pool -----------
    def conv_pool(patches_bf16, w_conv, b_conv):
        act = jnp.dot(patches_bf16, w_conv.astype(jnp.bfloat16),
                      preferred_element_type=jnp.float32) + b_conv
        act = jnp.maximum(act, 0.0)                              # [B*H*W, FEAT_PAD]
        return jnp.mean(act.reshape(BATCH, H * W, FEAT_PAD), axis=1)  # [B, FEAT_PAD]

    pooled_q = conv_pool(patches_ref[0], wq_conv_ref[...], bq_conv_ref[...])
    pooled_k = conv_pool(patches_ref[1], wk_conv, bk_conv)

    # ---- single packed head matmul: [2B,128] @ [128,256] on the MXU ---------
    pooled = jnp.concatenate([pooled_q, pooled_k], axis=0)           # [2B, FEAT_PAD]
    w_heads = jnp.concatenate([wq_head_ref[...], wk_head], axis=1)   # [FEAT_PAD, 2*HEAD_PAD]
    res = jnp.dot(pooled, w_heads, preferred_element_type=jnp.float32)
    res_q = res[:BATCH, :HEAD_PAD] + bq_head_ref[...]                # [B, HEAD_PAD]
    res_k = res[BATCH:, HEAD_PAD:] + bk_head                         # [B, HEAD_PAD]

    # projection occupies lanes 0:LOW_DIM; classifier logits lanes LOW_DIM:+NUM_CLASS
    lane = jax.lax.broadcasted_iota(jnp.int32, (BATCH, HEAD_PAD), 1)
    proj_mask = lane < LOW_DIM

    def l2_normalize(x):
        n = jnp.sqrt(jnp.sum(x * x, axis=1, keepdims=True))
        return x * pl.reciprocal(jnp.maximum(n, EPS), approx=True)

    qn = l2_normalize(jnp.where(proj_mask, res_q, 0.0))              # [B, HEAD_PAD]
    kn = l2_normalize(jnp.where(proj_mask, res_k, 0.0))
    logits = res_q[:, LOW_DIM:LOW_DIM + NUM_CLASS]                   # [B, NUM_CLASS]

    # ---- PLL: predicted_scores = softmax(output) * partial_Y (f32 exact) ----
    mx = jnp.max(logits, axis=1, keepdims=True)
    e = jnp.exp(logits - mx)
    pred = (e / jnp.sum(e, axis=1, keepdims=True)) * py_ref[...]

    # first-argmax pseudo labels (torch.max tie-break = first maximal index)
    col = jax.lax.broadcasted_iota(jnp.int32, pred.shape, 1)
    pmax = jnp.max(pred, axis=1, keepdims=True)
    labels_col = jnp.min(jnp.where(pred == pmax, col, NUM_CLASS),
                         axis=1, keepdims=True)                      # [B, 1]

    # score_prot = softmax(q @ prototypes_old^T); VPU mul + lane reduce
    # (no MXU fill, no transpose of the prototype matrix)
    proto0 = proto_ref[...]                                          # [C, HEAD_PAD]
    lp_cols = [jnp.sum(qn * proto0[c:c + 1, :], axis=1, keepdims=True)
               for c in range(NUM_CLASS)]
    lp = jnp.concatenate(lp_cols, axis=1)                            # [B, C]
    mx2 = jnp.max(lp, axis=1, keepdims=True)
    e2 = jnp.exp(lp - mx2)
    score_prot = e2 / jnp.sum(e2, axis=1, keepdims=True)

    # ---- sequential prototype momentum scatter (PyTorch collision order) ----
    class_rows = jax.lax.broadcasted_iota(jnp.int32, proto0.shape, 0)
    proto = proto0
    for i in range(BATCH):
        upd = proto * PROTO_M + (1.0 - PROTO_M) * qn[i:i + 1, :]
        proto = jnp.where(class_rows == labels_col[i:i + 1, :], upd, proto)
    pn = jnp.sqrt(jnp.sum(proto * proto, axis=1, keepdims=True))
    proto_out_ref[...] = proto * pl.reciprocal(jnp.maximum(pn, EPS), approx=True)

    # ---- fused dequeue/enqueue at queue_ptr (select based, no dynamic store) -
    ptr = ptr_ref[0]

    def enqueue(old, rows):
        rid = jax.lax.broadcasted_iota(jnp.int32, old.shape, 0)
        cur = old
        for i in range(BATCH):
            cur = jnp.where(rid == ptr + i, rows[i:i + 1, :], cur)
        return cur

    queue_out_ref[...] = enqueue(queue_ref[...], kn)
    qpseudo_out_ref[...] = enqueue(qpseudo_ref[...], pred)
    qpartial_out_ref[...] = enqueue(qpartial_ref[...], py_ref[...])

    # ---- single lane-dense result slab: rows 0:B=q, B:2B=k, 2B:3B=cls slab --
    zpad = jnp.zeros((BATCH, HEAD_PAD - 3 * NUM_CLASS), jnp.float32)
    slab = jnp.concatenate([logits, pred, score_prot, zpad], axis=1)  # [B, HEAD_PAD]
    main_ref[...] = jnp.concatenate([qn, kn, slab], axis=0)


# ----------------------------- wrappers ---------------------------------------
def im2col_3x3(x):
    """x: [N, Cin, H, W] -> patches [N*H*W, Cin*9], 3x3 conv with pad=1.

    C-major, (kh,kw)-minor tap order, matching the w_conv row order."""
    n, c, h, w = x.shape
    xp = jnp.pad(x.astype(jnp.float32), ((0, 0), (0, 0), (1, 1), (1, 1)))
    cols = [xp[:, :, dh:dh + h, dw:dw + w] for dh in range(3) for dw in range(3)]
    p = jnp.stack(cols, axis=2)                      # [N, C, 9, H, W]
    p = p.reshape(n, c * 9, h * w)
    p = jnp.transpose(p, (0, 2, 1))                  # [N, H*W, C*9]
    return p.reshape(n * h * w, c * 9)


def _cost_estimate():
    conv_flops = 2 * 2 * ROWS_PER_VIEW * K_PAD * FEAT_PAD
    head_flops = 2 * (2 * BATCH) * FEAT_PAD * (2 * HEAD_PAD)
    proto_flops = 2 * BATCH * NUM_CLASS * HEAD_PAD
    flops = conv_flops + head_flops + proto_flops
    transcendentals = 3 * BATCH * NUM_CLASS + 2 * BATCH + NUM_CLASS
    bytes_in = (2 * ROWS_PER_VIEW * K_PAD * 2                      # bf16 patches
                + 4 * (2 * (K_PAD * FEAT_PAD + FEAT_PAD
                            + FEAT_PAD * HEAD_PAD + HEAD_PAD)
                       + BATCH * NUM_CLASS
                       + NUM_CLASS * HEAD_PAD
                       + MOCO_QUEUE * (HEAD_PAD + 2 * NUM_CLASS))
                + 4)
    bytes_out = 4 * (3 * BATCH * HEAD_PAD
                     + NUM_CLASS * HEAD_PAD
                     + MOCO_QUEUE * (HEAD_PAD + 2 * NUM_CLASS)
                     + K_PAD * FEAT_PAD + FEAT_PAD
                     + FEAT_PAD * HEAD_PAD + HEAD_PAD)
    return pl.CostEstimate(flops=flops, transcendentals=transcendentals,
                           bytes_accessed=bytes_in + bytes_out)


def fused_forward(queue_ptr, patches, params_q, params_k, partial_y,
                  prototypes, queue, queue_pseudo, queue_partial):
    """Single pallas_call: both encoder views + PLL + prototype/queue updates."""
    vmem = pl.BlockSpec(memory_space=pltpu.MemorySpace.VMEM)
    smem = pl.BlockSpec(memory_space=pltpu.MemorySpace.SMEM)
    out_shapes = (
        jax.ShapeDtypeStruct((3 * BATCH, HEAD_PAD), jnp.float32),     # q | k | cls slab
        jax.ShapeDtypeStruct((NUM_CLASS, HEAD_PAD), jnp.float32),     # prototypes'
        jax.ShapeDtypeStruct((MOCO_QUEUE, HEAD_PAD), jnp.float32),    # queue'
        jax.ShapeDtypeStruct((MOCO_QUEUE, NUM_CLASS), jnp.float32),   # queue_pseudo'
        jax.ShapeDtypeStruct((MOCO_QUEUE, NUM_CLASS), jnp.float32),   # queue_partial'
        jax.ShapeDtypeStruct((K_PAD, FEAT_PAD), jnp.float32),         # k conv weight'
        jax.ShapeDtypeStruct((1, FEAT_PAD), jnp.float32),             # k conv bias'
        jax.ShapeDtypeStruct((FEAT_PAD, HEAD_PAD), jnp.float32),      # k head weight'
        jax.ShapeDtypeStruct((1, HEAD_PAD), jnp.float32),             # k head bias'
    )
    # No grid / pipelining on purpose: total live footprint is < 1 MiB.
    # No input_output_aliases: the jit inputs are not donated, so aliasing
    # would only force XLA to insert defensive copies in front of the call.
    return pl.pallas_call(
        fused_kernel,
        out_shape=out_shapes,
        in_specs=[smem] + [vmem] * 14,
        out_specs=tuple([vmem] * len(out_shapes)),
        cost_estimate=_cost_estimate(),
    )(queue_ptr, patches,
      params_q["w_conv"], params_q["b_conv"],
      params_q["w_head"], params_q["b_head"],
      params_k["w_conv"], params_k["b_conv"],
      params_k["w_head"], params_k["b_head"],
      partial_y, prototypes, queue, queue_pseudo, queue_partial)


def ins_forward(params_q, params_k, buffers, img_q, im_k, partial_y):
    """INS.forward (bag_flag=False, eval_only=False). Returns torch-equivalent
    outputs plus the updated state (key params + buffers)."""
    # TODO(synk): at production backbone sizes build the 3x3 im2col inside the
    # kernel from the padded image instead of materializing patches here.
    imgs = jnp.concatenate([img_q, im_k], axis=0)                  # [2B, C, H, W]
    patches = im2col_3x3(imgs)                                     # [2B*H*W, 27]
    patches = jnp.pad(patches, ((0, 0), (0, K_PAD - K_RAW)))
    patches = patches.astype(jnp.bfloat16).reshape(2, ROWS_PER_VIEW, K_PAD)

    (main, new_proto, new_queue, new_qpseudo, new_qpartial,
     wk_conv, bk_conv, wk_head, bk_head) = fused_forward(
        buffers["queue_ptr"], patches, params_q, params_k, partial_y,
        buffers["prototypes"], buffers["queue"], buffers["queue_pseudo"],
        buffers["queue_partial"])

    q = main[0:BATCH, :LOW_DIM]
    k = main[BATCH:2 * BATCH, :LOW_DIM]
    output = main[2 * BATCH:, 0:NUM_CLASS]
    predicted_scores = main[2 * BATCH:, NUM_CLASS:2 * NUM_CLASS]
    score_prot = main[2 * BATCH:, 2 * NUM_CLASS:3 * NUM_CLASS]

    # feature banks use the PRE-enqueue queue state, as in the PyTorch forward.
    # (concat_all_gather and the DDP shuffle/unshuffle are no-ops at world_size=1.)
    features = jnp.concatenate([q, k, buffers["queue"][:, :LOW_DIM]], axis=0)
    pseudo_scores = jnp.concatenate(
        [predicted_scores, predicted_scores, buffers["queue_pseudo"]], axis=0)
    partial_target = jnp.concatenate(
        [partial_y, partial_y, buffers["queue_partial"]], axis=0)

    new_params_k = dict(w_conv=wk_conv, b_conv=bk_conv,
                        w_head=wk_head, b_head=bk_head)
    new_buffers = dict(
        queue=new_queue, queue_pseudo=new_qpseudo, queue_partial=new_qpartial,
        queue_ptr=((buffers["queue_ptr"] + BATCH) % MOCO_QUEUE).astype(jnp.int32),
        prototypes=new_proto)
    return (output, features, pseudo_scores, partial_target, score_prot,
            new_params_k, new_buffers)


# ----------------------------- init -------------------------------------------
def init_encoder_params(key):
    """True weights at the original widths, stored zero-padded / packed into
    lane-friendly shapes (padded lanes are exact zeros; results unchanged).
    The head weight packs the projection (lanes 0:LOW_DIM) and the classifier
    (lanes LOW_DIM:LOW_DIM+NUM_CLASS) of the same encoder."""
    k1, k2, k3 = jax.random.split(key, 3)
    w_conv = 0.1 * jax.random.normal(k1, (K_RAW, FEAT), jnp.float32)
    w_cls = 0.1 * jax.random.normal(k2, (FEAT, NUM_CLASS), jnp.float32)
    w_proj = 0.1 * jax.random.normal(k3, (FEAT, LOW_DIM), jnp.float32)
    w_head = jnp.zeros((FEAT_PAD, HEAD_PAD), jnp.float32)
    w_head = w_head.at[:FEAT, :LOW_DIM].set(w_proj)
    w_head = w_head.at[:FEAT, LOW_DIM:LOW_DIM + NUM_CLASS].set(w_cls)
    return dict(
        w_conv=jnp.pad(w_conv, ((0, K_PAD - K_RAW), (0, FEAT_PAD - FEAT))),
        b_conv=jnp.zeros((1, FEAT_PAD), jnp.float32),
        w_head=w_head,
        b_head=jnp.zeros((1, HEAD_PAD), jnp.float32),
    )


def init_buffers(key):
    k1, k2, k3 = jax.random.split(key, 3)
    queue = jax.random.normal(k1, (MOCO_QUEUE, LOW_DIM), jnp.float32)
    # torch: self.queue = F.normalize(self.queue, dim=0)  (column-wise!)
    col_norm = jnp.sqrt(jnp.sum(queue * queue, axis=0, keepdims=True))
    queue = queue / jnp.maximum(col_norm, EPS)
    return dict(
        queue=jnp.pad(queue, ((0, 0), (0, HEAD_PAD - LOW_DIM))),     # lane-padded
        queue_pseudo=jax.random.normal(k2, (MOCO_QUEUE, NUM_CLASS), jnp.float32),
        queue_partial=jax.random.normal(k3, (MOCO_QUEUE, NUM_CLASS), jnp.float32),
        queue_ptr=jnp.zeros((1,), jnp.int32),
        prototypes=jnp.zeros((NUM_CLASS, HEAD_PAD), jnp.float32),    # lane-padded
    )


# ----------------------------- main --------------------------------------------
if __name__ == "__main__":
    root = jax.random.PRNGKey(0)
    kp, kb, ki1, ki2, kpy, kl = jax.random.split(root, 6)

    params_q = init_encoder_params(kp)
    params_k = jax.tree_util.tree_map(lambda x: x, params_q)   # copy_(param_q)
    buffers = init_buffers(kb)

    img_q = jax.random.normal(ki1, (BATCH, C_IN, H, W), jnp.float32)
    im_k = jax.random.normal(ki2, (BATCH, C_IN, H, W), jnp.float32)

    # partial label matrix in {0,1}, each row guaranteed >= one positive
    partial_y = jax.random.bernoulli(kpy, 0.5, (BATCH, NUM_CLASS)).astype(jnp.float32)
    true_lab = jax.random.randint(kl, (BATCH,), 0, NUM_CLASS)
    partial_y = jnp.maximum(partial_y, jax.nn.one_hot(true_lab, NUM_CLASS))

    forward = jax.jit(ins_forward)
    (output, features, pseudo_scores, partial_target, score_prot,
     params_k, buffers) = forward(params_q, params_k, buffers,
                                  img_q, im_k, partial_y)
    jax.block_until_ready((output, features, pseudo_scores, partial_target,
                           score_prot, params_k, buffers))

    assert output.shape == (BATCH, NUM_CLASS)
    assert features.shape == (2 * BATCH + MOCO_QUEUE, LOW_DIM)
    assert pseudo_scores.shape == (2 * BATCH + MOCO_QUEUE, NUM_CLASS)
    assert partial_target.shape == (2 * BATCH + MOCO_QUEUE, NUM_CLASS)
    assert score_prot.shape == (BATCH, NUM_CLASS)
    assert buffers["prototypes"].shape == (NUM_CLASS, HEAD_PAD)
    assert bool(jnp.allclose(jnp.sum(score_prot, axis=1), 1.0, atol=1e-5))
    assert bool(jnp.all(jnp.isfinite(output)))
    # fused enqueue wrote k at queue_ptr (= 0) and advanced the pointer
    assert bool(jnp.allclose(buffers["queue"][:BATCH, :LOW_DIM],
                             features[BATCH:2 * BATCH], atol=1e-6))
    assert int(buffers["queue_ptr"][0]) == BATCH

    print("KERNEL_OK")
</pallas_src>

<mosaic_0001>
module attributes {stable_mosaic.version = 11 : i64} {
  func.func @fused_kernel(%arg0: memref<1xi32, #tpu.memory_space<smem>>, %arg1: memref<2x512x32xbf16, #tpu.memory_space<vmem>>, %arg2: memref<32x128xf32, #tpu.memory_space<vmem>>, %arg3: memref<1x128xf32, #tpu.memory_space<vmem>>, %arg4: memref<128x128xf32, #tpu.memory_space<vmem>>, %arg5: memref<1x128xf32, #tpu.memory_space<vmem>>, %arg6: memref<32x128xf32, #tpu.memory_space<vmem>>, %arg7: memref<1x128xf32, #tpu.memory_space<vmem>>, %arg8: memref<128x128xf32, #tpu.memory_space<vmem>>, %arg9: memref<1x128xf32, #tpu.memory_space<vmem>>, %arg10: memref<2x4xf32, #tpu.memory_space<vmem>>, %arg11: memref<4x128xf32, #tpu.memory_space<vmem>>, %arg12: memref<8x128xf32, #tpu.memory_space<vmem>>, %arg13: memref<8x4xf32, #tpu.memory_space<vmem>>, %arg14: memref<8x4xf32, #tpu.memory_space<vmem>>, %arg15: memref<6x128xf32, #tpu.memory_space<vmem>>, %arg16: memref<4x128xf32, #tpu.memory_space<vmem>>, %arg17: memref<8x128xf32, #tpu.memory_space<vmem>>, %arg18: memref<8x4xf32, #tpu.memory_space<vmem>>, %arg19: memref<8x4xf32, #tpu.memory_space<vmem>>, %arg20: memref<32x128xf32, #tpu.memory_space<vmem>>, %arg21: memref<1x128xf32, #tpu.memory_space<vmem>>, %arg22: memref<128x128xf32, #tpu.memory_space<vmem>>, %arg23: memref<1x128xf32, #tpu.memory_space<vmem>>) attributes {dimension_semantics = [], scalar_prefetch = 0 : i64, scratch_operands = 0 : i64, tpu.core_type = #tpu.core_type<tc>} {
    %c0 = arith.constant 0 : index
    %c0_0 = arith.constant 0 : index
    %0 = vector.load %arg6[%c0, %c0_0] : memref<32x128xf32, #tpu.memory_space<vmem>>, vector<32x128xf32>
    %cst = arith.constant 9.990000e-01 : f32
    %1 = vector.broadcast %cst : f32 to vector<32x128xf32>
    %2 = arith.mulf %0, %1 : vector<32x128xf32>
    %c0_1 = arith.constant 0 : index
    %c0_2 = arith.constant 0 : index
    %3 = vector.load %arg2[%c0_1, %c0_2] : memref<32x128xf32, #tpu.memory_space<vmem>>, vector<32x128xf32>
    %cst_3 = arith.constant 1.000000e-03 : f32
    %4 = vector.broadcast %cst_3 : f32 to vector<32x128xf32>
    %5 = arith.mulf %3, %4 : vector<32x128xf32>
    %6 = arith.addf %2, %5 : vector<32x128xf32>
    %c0_4 = arith.constant 0 : index
    %c0_5 = arith.constant 0 : index
    %7 = vector.load %arg7[%c0_4, %c0_5] : memref<1x128xf32, #tpu.memory_space<vmem>>, vector<1x128xf32>
    %cst_6 = arith.constant 9.990000e-01 : f32
    %8 = vector.broadcast %cst_6 : f32 to vector<1x128xf32>
    %9 = arith.mulf %7, %8 : vector<1x128xf32>
    %c0_7 = arith.constant 0 : index
    %c0_8 = arith.constant 0 : index
    %10 = vector.load %arg3[%c0_7, %c0_8] : memref<1x128xf32, #tpu.memory_space<vmem>>, vector<1x128xf32>
    %cst_9 = arith.constant 1.000000e-03 : f32
    %11 = vector.broadcast %cst_9 : f32 to vector<1x128xf32>
    %12 = arith.mulf %10, %11 : vector<1x128xf32>
    %13 = arith.addf %9, %12 : vector<1x128xf32>
    %c0_10 = arith.constant 0 : index
    %c0_11 = arith.constant 0 : index
    %14 = vector.load %arg8[%c0_10, %c0_11] : memref<128x128xf32, #tpu.memory_space<vmem>>, vector<128x128xf32>
    %cst_12 = arith.constant 9.990000e-01 : f32
    %15 = vector.broadcast %cst_12 : f32 to vector<128x128xf32>
    %16 = arith.mulf %14, %15 : vector<128x128xf32>
    %c0_13 = arith.constant 0 : index
    %c0_14 = arith.constant 0 : index
    %17 = vector.load %arg4[%c0_13, %c0_14] : memref<128x128xf32, #tpu.memory_space<vmem>>, vector<128x128xf32>
    %cst_15 = arith.constant 1.000000e-03 : f32
    %18 = vector.broadcast %cst_15 : f32 to vector<128x128xf32>
    %19 = arith.mulf %17, %18 : vector<128x128xf32>
    %20 = arith.addf %16, %19 : vector<128x128xf32>
    %c0_16 = arith.constant 0 : index
    %c0_17 = arith.constant 0 : index
    %21 = vector.load %arg9[%c0_16, %c0_17] : memref<1x128xf32, #tpu.memory_space<vmem>>, vector<1x128xf32>
    %cst_18 = arith.constant 9.990000e-01 : f32
    %22 = vector.broadcast %cst_18 : f32 to vector<1x128xf32>
    %23 = arith.mulf %21, %22 : vector<1x128xf32>
    %c0_19 = arith.constant 0 : index
    %c0_20 = arith.constant 0 : index
    %24 = vector.load %arg5[%c0_19, %c0_20] : memref<1x128xf32, #tpu.memory_space<vmem>>, vector<1x128xf32>
    %cst_21 = arith.constant 1.000000e-03 : f32
    %25 = vector.broadcast %cst_21 : f32 to vector<1x128xf32>
    %26 = arith.mulf %24, %25 : vector<1x128xf32>
    %27 = arith.addf %23, %26 : vector<1x128xf32>
    %c0_22 = arith.constant 0 : index
    %c0_23 = arith.constant 0 : index
    %28 = vector.load %arg20[%c0_22, %c0_23] : memref<32x128xf32, #tpu.memory_space<vmem>>, vector<32x128xf32>
    tpu.vector_store %arg20[%c0_22, %c0_23], %6 {strides = array<i32>} : memref<32x128xf32, #tpu.memory_space<vmem>>, vector<32x128xf32>,
    %c0_24 = arith.constant 0 : index
    %c0_25 = arith.constant 0 : index
    %29 = vector.load %arg21[%c0_24, %c0_25] : memref<1x128xf32, #tpu.memory_space<vmem>>, vector<1x128xf32>
    tpu.vector_store %arg21[%c0_24, %c0_25], %13 {strides = array<i32>} : memref<1x128xf32, #tpu.memory_space<vmem>>, vector<1x128xf32>,
    %c0_26 = arith.constant 0 : index
    %c0_27 = arith.constant 0 : index
    %30 = vector.load %arg22[%c0_26, %c0_27] : memref<128x128xf32, #tpu.memory_space<vmem>>, vector<128x128xf32>
    tpu.vector_store %arg22[%c0_26, %c0_27], %20 {strides = array<i32>} : memref<128x128xf32, #tpu.memory_space<vmem>>, vector<128x128xf32>,
    %c0_28 = arith.constant 0 : index
    %c0_29 = arith.constant 0 : index
    %31 = vector.load %arg23[%c0_28, %c0_29] : memref<1x128xf32, #tpu.memory_space<vmem>>, vector<1x128xf32>
    tpu.vector_store %arg23[%c0_28, %c0_29], %27 {strides = array<i32>} : memref<1x128xf32, #tpu.memory_space<vmem>>, vector<1x128xf32>,
    %c0_30 = arith.constant 0 : index
    %c0_31 = arith.constant 0 : index
    %c0_32 = arith.constant 0 : index
    %32 = vector.load %arg1[%c0_30, %c0_31, %c0_32] : memref<2x512x32xbf16, #tpu.memory_space<vmem>>, vector<1x512x32xbf16>
    %33 = vector.shape_cast %32 : vector<1x512x32xbf16> to vector<512x32xbf16>
    %c0_33 = arith.constant 0 : index
    %c0_34 = arith.constant 0 : index
    %34 = vector.load %arg2[%c0_33, %c0_34] : memref<32x128xf32, #tpu.memory_space<vmem>>, vector<32x128xf32>
    %c0_35 = arith.constant 0 : index
    %c0_36 = arith.constant 0 : index
    %35 = vector.load %arg3[%c0_35, %c0_36] : memref<1x128xf32, #tpu.memory_space<vmem>>, vector<1x128xf32>
    %36 = arith.truncf %34 : vector<32x128xf32> to vector<32x128xbf16>
    %cst_37 = arith.constant dense<0.000000e+00> : vector<512x128xf32>
    %37 = tpu.matmul %33, %36, %cst_37 {dimension_numbers = #tpu.dot_dimension_numbers<[1], [0], [0], [1], [0, 0, 1, 1], [], []>} : vector<512x32xbf16>, vector<32x128xbf16>, vector<512x128xf32> -> vector<512x128xf32>
    %38 = vector.broadcast %35 : vector<1x128xf32> to vector<512x128xf32>
    %39 = arith.addf %37, %38 : vector<512x128xf32>
    %cst_38 = arith.constant 0.000000e+00 : f32
    %40 = vector.broadcast %cst_38 : f32 to vector<512x128xf32>
    %41 = arith.maximumf %39, %40 : vector<512x128xf32>
    %42 = vector.shape_cast %41 : vector<512x128xf32> to vector<2x256x128xf32>
    %cst_39 = arith.constant dense<0.000000e+00> : vector<2x128xf32>
    %43 = vector.multi_reduction <add>, %42, %cst_39 [1] : vector<2x256x128xf32> to vector<2x128xf32>
    %cst_40 = arith.constant 2.560000e+02 : f32
    %44 = vector.broadcast %cst_40 : f32 to vector<2x128xf32>
    %45 = arith.divf %43, %44 : vector<2x128xf32>
    %c1 = arith.constant 1 : index
    %c0_41 = arith.constant 0 : index
    %c0_42 = arith.constant 0 : index
    %46 = vector.load %arg1[%c1, %c0_41, %c0_42] : memref<2x512x32xbf16, #tpu.memory_space<vmem>>, vector<1x512x32xbf16>
    %47 = vector.shape_cast %46 : vector<1x512x32xbf16> to vector<512x32xbf16>
    %48 = arith.truncf %6 : vector<32x128xf32> to vector<32x128xbf16>
    %cst_43 = arith.constant dense<0.000000e+00> : vector<512x128xf32>
    %49 = tpu.matmul %47, %48, %cst_43 {dimension_numbers = #tpu.dot_dimension_numbers<[1], [0], [0], [1], [0, 0, 1, 1], [], []>} : vector<512x32xbf16>, vector<32x128xbf16>, vector<512x128xf32> -> vector<512x128xf32>
    %50 = vector.broadcast %13 : vector<1x128xf32> to vector<512x128xf32>
    %51 = arith.addf %49, %50 : vector<512x128xf32>
    %cst_44 = arith.constant 0.000000e+00 : f32
    %52 = vector.broadcast %cst_44 : f32 to vector<512x128xf32>
    %53 = arith.maximumf %51, %52 : vector<512x128xf32>
    %54 = vector.shape_cast %53 : vector<512x128xf32> to vector<2x256x128xf32>
    %cst_45 = arith.constant dense<0.000000e+00> : vector<2x128xf32>
    %55 = vector.multi_reduction <add>, %54, %cst_45 [1] : vector<2x256x128xf32> to vector<2x128xf32>
    %cst_46 = arith.constant 2.560000e+02 : f32
    %56 = vector.broadcast %cst_46 : f32 to vector<2x128xf32>
    %57 = arith.divf %55, %56 : vector<2x128xf32>
    %58 = tpu.concatenate %45, %57 in 0 : vector<2x128xf32>, vector<2x128xf32> -> vector<4x128xf32>
    %c0_47 = arith.constant 0 : index
    %c0_48 = arith.constant 0 : index
    %59 = vector.load %arg4[%c0_47, %c0_48] : memref<128x128xf32, #tpu.memory_space<vmem>>, vector<128x128xf32>
    %60 = tpu.concatenate %59, %20 in 1 : vector<128x128xf32>, vector<128x128xf32> -> vector<128x256xf32>
    %cst_49 = arith.constant dense<0.000000e+00> : vector<4x256xf32>
    %61 = tpu.matmul %58, %60, %cst_49 {dimension_numbers = #tpu.dot_dimension_numbers<[1], [0], [0], [1], [0, 0, 1, 1], [], []>} : vector<4x128xf32>, vector<128x256xf32>, vector<4x256xf32> -> vector<4x256xf32>
    %62 = vector.extract_strided_slice %61 {offsets = [0, 0], sizes = [2, 128], strides = [1, 1]} : vector<4x256xf32> to vector<2x128xf32>
    %c0_50 = arith.constant 0 : index
    %c0_51 = arith.constant 0 : index
    %63 = vector.load %arg5[%c0_50, %c0_51] : memref<1x128xf32, #tpu.memory_space<vmem>>, vector<1x128xf32>
    %64 = vector.broadcast %63 : vector<1x128xf32> to vector<2x128xf32>
    %65 = arith.addf %62, %64 : vector<2x128xf32>
    %66 = vector.extract_strided_slice %61 {offsets = [2, 128], sizes = [2, 128], strides = [1, 1]} : vector<4x256xf32> to vector<2x128xf32>
    %67 = vector.broadcast %27 : vector<1x128xf32> to vector<2x128xf32>
    %68 = arith.addf %66, %67 : vector<2x128xf32>
    %69 = tpu.iota {dimensions = array<i32: 1>} : vector<2x128xi32>
    %c8_i32 = arith.constant 8 : i32
    %70 = vector.broadcast %c8_i32 : i32 to vector<2x128xi32>
    %71 = arith.cmpi slt, %69, %70 : vector<2x128xi32>
    %cst_52 = arith.constant 0.000000e+00 : f32
    %72 = vector.broadcast %cst_52 : f32 to vector<2x128xf32>
    %73 = arith.select %71, %65, %72 : vector<2x128xi1>, vector<2x128xf32>
    %74 = arith.mulf %73, %73 : vector<2x128xf32>
    %cst_53 = arith.constant dense<0.000000e+00> : vector<2xf32>
    %75 = vector.multi_reduction <add>, %74, %cst_53 [1] : vector<2x128xf32> to vector<2xf32>
    %76 = vector.shape_cast %75 : vector<2xf32> to vector<2x1xf32>
    %77 = math.sqrt %76 : vector<2x1xf32>
    %cst_54 = arith.constant 9.99999996E-13 : f32
    %78 = vector.broadcast %cst_54 : f32 to vector<2x1xf32>
    %79 = arith.maximumf %77, %78 : vector<2x1xf32>
    %80 = tpu.reciprocal %79 {approx = true} : vector<2x1xf32> -> vector<2x1xf32>
    %81 = vector.broadcast %80 : vector<2x1xf32> to vector<2x128xf32>
    %82 = arith.mulf %73, %81 : vector<2x128xf32>
    %cst_55 = arith.constant 0.000000e+00 : f32
    %83 = vector.broadcast %cst_55 : f32 to vector<2x128xf32>
    %84 = arith.select %71, %68, %83 : vector<2x128xi1>, vector<2x128xf32>
    %85 = arith.mulf %84, %84 : vector<2x128xf32>
    %cst_56 = arith.constant dense<0.000000e+00> : vector<2xf32>
    %86 = vector.multi_reduction <add>, %85, %cst_56 [1] : vector<2x128xf32> to vector<2xf32>
    %87 = vector.shape_cast %86 : vector<2xf32> to vector<2x1xf32>
    %88 = math.sqrt %87 : vector<2x1xf32>
    %cst_57 = arith.constant 9.99999996E-13 : f32
    %89 = vector.broadcast %cst_57 : f32 to vector<2x1xf32>
    %90 = arith.maximumf %88, %89 : vector<2x1xf32>
    %91 = tpu.reciprocal %90 {approx = true} : vector<2x1xf32> -> vector<2x1xf32>
    %92 = vector.broadcast %91 : vector<2x1xf32> to vector<2x128xf32>
    %93 = arith.mulf %84, %92 : vector<2x128xf32>
    %94 = vector.extract_strided_slice %65 {offsets = [0, 8], sizes = [2, 4], strides = [1, 1]} : vector<2x128xf32> to vector<2x4xf32>
    %cst_58 = arith.constant dense<0xFF800000> : vector<2xf32>
    %95 = vector.multi_reduction <maximumf>, %94, %cst_58 [1] : vector<2x4xf32> to vector<2xf32>
    %96 = vector.shape_cast %95 : vector<2xf32> to vector<2x1xf32>
    %97 = vector.broadcast %96 : vector<2x1xf32> to vector<2x4xf32>
    %98 = arith.subf %94, %97 : vector<2x4xf32>
    %99 = math.exp %98 : vector<2x4xf32>
    %cst_59 = arith.constant dense<0.000000e+00> : vector<2xf32>
    %100 = vector.multi_reduction <add>, %99, %cst_59 [1] : vector<2x4xf32> to vector<2xf32>
    %101 = vector.shape_cast %100 : vector<2xf32> to vector<2x1xf32>
    %102 = vector.broadcast %101 : vector<2x1xf32> to vector<2x4xf32>
    %103 = arith.divf %99, %102 : vector<2x4xf32>
    %c0_60 = arith.constant 0 : index
    %c0_61 = arith.constant 0 : index
    %104 = vector.load %arg10[%c0_60, %c0_61] : memref<2x4xf32, #tpu.memory_space<vmem>>, vector<2x4xf32>
    %105 = arith.mulf %103, %104 : vector<2x4xf32>
    %106 = tpu.iota {dimensions = array<i32: 1>} : vector<2x4xi32>
    %cst_62 = arith.constant dense<0xFF800000> : vector<2xf32>
    %107 = vector.multi_reduction <maximumf>, %105, %cst_62 [1] : vector<2x4xf32> to vector<2xf32>
    %108 = vector.shape_cast %107 : vector<2xf32> to vector<2x1xf32>
    %109 = vector.broadcast %108 : vector<2x1xf32> to vector<2x4xf32>
    %110 = arith.cmpf oeq, %105, %109 : vector<2x4xf32>
    %c4_i32 = arith.constant 4 : i32
    %111 = vector.broadcast %c4_i32 : i32 to vector<2x4xi32>
    %112 = arith.select %110, %106, %111 : vector<2x4xi1>, vector<2x4xi32>
    %cst_63 = arith.constant dense<2147483647> : vector<2xi32>
    %113 = vector.multi_reduction <minsi>, %112, %cst_63 [1] : vector<2x4xi32> to vector<2xi32>
    %114 = vector.shape_cast %113 : vector<2xi32> to vector<2x1xi32>
    %c0_64 = arith.constant 0 : index
    %c0_65 = arith.constant 0 : index
    %115 = vector.load %arg11[%c0_64, %c0_65] : memref<4x128xf32, #tpu.memory_space<vmem>>, vector<4x128xf32>
    %116 = vector.extract_strided_slice %115 {offsets = [0, 0], sizes = [1, 128], strides = [1, 1]} : vector<4x128xf32> to vector<1x128xf32>
    %117 = vector.broadcast %116 : vector<1x128xf32> to vector<2x128xf32>
    %118 = arith.mulf %82, %117 : vector<2x128xf32>
    %cst_66 = arith.constant dense<0.000000e+00> : vector<2xf32>
    %119 = vector.multi_reduction <add>, %118, %cst_66 [1] : vector<2x128xf32> to vector<2xf32>
    %120 = vector.shape_cast %119 : vector<2xf32> to vector<2x1xf32>
    %121 = vector.extract_strided_slice %115 {offsets = [1, 0], sizes = [1, 128], strides = [1, 1]} : vector<4x128xf32> to vector<1x128xf32>
    %122 = vector.broadcast %121 : vector<1x128xf32> to vector<2x128xf32>
    %123 = arith.mulf %82, %122 : vector<2x128xf32>
    %cst_67 = arith.constant dense<0.000000e+00> : vector<2xf32>
    %124 = vector.multi_reduction <add>, %123, %cst_67 [1] : vector<2x128xf32> to vector<2xf32>
    %125 = vector.shape_cast %124 : vector<2xf32> to vector<2x1xf32>
    %126 = vector.extract_strided_slice %115 {offsets = [2, 0], sizes = [1, 128], strides = [1, 1]} : vector<4x128xf32> to vector<1x128xf32>
    %127 = vector.broadcast %126 : vector<1x128xf32> to vector<2x128xf32>
    %128 = arith.mulf %82, %127 : vector<2x128xf32>
    %cst_68 = arith.constant dense<0.000000e+00> : vector<2xf32>
    %129 = vector.multi_reduction <add>, %128, %cst_68 [1] : vector<2x128xf32> to vector<2xf32>
    %130 = vector.shape_cast %129 : vector<2xf32> to vector<2x1xf32>
    %131 = vector.extract_strided_slice %115 {offsets = [3, 0], sizes = [1, 128], strides = [1, 1]} : vector<4x128xf32> to vector<1x128xf32>
    %132 = vector.broadcast %131 : vector<1x128xf32> to vector<2x128xf32>
    %133 = arith.mulf %82, %132 : vector<2x128xf32>
    %cst_69 = arith.constant dense<0.000000e+00> : vector<2xf32>
    %134 = vector.multi_reduction <add>, %133, %cst_69 [1] : vector<2x128xf32> to vector<2xf32>
    %135 = vector.shape_cast %134 : vector<2xf32> to vector<2x1xf32>
    %136 = tpu.concatenate %120, %125, %130, %135 in 1 : vector<2x1xf32>, vector<2x1xf32>, vector<2x1xf32>, vector<2x1xf32> -> vector<2x4xf32>
    %cst_70 = arith.constant dense<0xFF800000> : vector<2xf32>
    %137 = vector.multi_reduction <maximumf>, %136, %cst_70 [1] : vector<2x4xf32> to vector<2xf32>
    %138 = vector.shape_cast %137 : vector<2xf32> to vector<2x1xf32>
    %139 = vector.broadcast %138 : vector<2x1xf32> to vector<2x4xf32>
    %140 = arith.subf %136, %139 : vector<2x4xf32>
    %141 = math.exp %140 : vector<2x4xf32>
    %cst_71 = arith.constant dense<0.000000e+00> : vector<2xf32>
    %142 = vector.multi_reduction <add>, %141, %cst_71 [1] : vector<2x4xf32> to vector<2xf32>
    %143 = vector.shape_cast %142 : vector<2xf32> to vector<2x1xf32>
    %144 = vector.broadcast %143 : vector<2x1xf32> to vector<2x4xf32>
    %145 = arith.divf %141, %144 : vector<2x4xf32>
    %146 = tpu.iota {dimensions = array<i32: 0>} : vector<4x128xi32>
    %cst_72 = arith.constant 9.900000e-01 : f32
    %147 = vector.broadcast %cst_72 : f32 to vector<4x128xf32>
    %148 = arith.mulf %115, %147 : vector<4x128xf32>
    %149 = vector.extract_strided_slice %82 {offsets = [0, 0], sizes = [1, 128], strides = [1, 1]} : vector<2x128xf32> to vector<1x128xf32>
    %cst_73 = arith.constant 0.00999999977 : f32
    %150 = vector.broadcast %cst_73 : f32 to vector<1x128xf32>
    %151 = arith.mulf %150, %149 : vector<1x128xf32>
    %152 = vector.broadcast %151 : vector<1x128xf32> to vector<4x128xf32>
    %153 = arith.addf %148, %152 : vector<4x128xf32>
    %154 = vector.extract_strided_slice %114 {offsets = [0, 0], sizes = [1, 1], strides = [1, 1]} : vector<2x1xi32> to vector<1x1xi32>
    %155 = vector.broadcast %154 : vector<1x1xi32> to vector<4x128xi32>
    %156 = arith.cmpi eq, %146, %155 : vector<4x128xi32>
    %157 = arith.select %156, %153, %115 : vector<4x128xi1>, vector<4x128xf32>
    %cst_74 = arith.constant 9.900000e-01 : f32
    %158 = vector.broadcast %cst_74 : f32 to vector<4x128xf32>
    %159 = arith.mulf %157, %158 : vector<4x128xf32>
    %160 = vector.extract_strided_slice %82 {offsets = [1, 0], sizes = [1, 128], strides = [1, 1]} : vector<2x128xf32> to vector<1x128xf32>
    %cst_75 = arith.constant 0.00999999977 : f32
    %161 = vector.broadcast %cst_75 : f32 to vector<1x128xf32>
    %162 = arith.mulf %161, %160 : vector<1x128xf32>
    %163 = vector.broadcast %162 : vector<1x128xf32> to vector<4x128xf32>
    %164 = arith.addf %159, %163 : vector<4x128xf32>
    %165 = vector.extract_strided_slice %114 {offsets = [1, 0], sizes = [1, 1], strides = [1, 1]} : vector<2x1xi32> to vector<1x1xi32>
    %166 = vector.broadcast %165 : vector<1x1xi32> to vector<4x128xi32>
    %167 = arith.cmpi eq, %146, %166 : vector<4x128xi32>
    %168 = arith.select %167, %164, %157 : vector<4x128xi1>, vector<4x128xf32>
    %169 = arith.mulf %168, %168 : vector<4x128xf32>
    %cst_76 = arith.constant dense<0.000000e+00> : vector<4xf32>
    %170 = vector.multi_reduction <add>, %169, %cst_76 [1] : vector<4x128xf32> to vector<4xf32>
    %171 = vector.shape_cast %170 : vector<4xf32> to vector<4x1xf32>
    %172 = math.sqrt %171 : vector<4x1xf32>
    %cst_77 = arith.constant 9.99999996E-13 : f32
    %173 = vector.broadcast %cst_77 : f32 to vector<4x1xf32>
    %174 = arith.maximumf %172, %173 : vector<4x1xf32>
    %175 = tpu.reciprocal %174 {approx = true} : vector<4x1xf32> -> vector<4x1xf32>
    %176 = vector.broadcast %175 : vector<4x1xf32> to vector<4x128xf32>
    %177 = arith.mulf %168, %176 : vector<4x128xf32>
    %c0_78 = arith.constant 0 : index
    %c0_79 = arith.constant 0 : index
    %178 = vector.load %arg16[%c0_78, %c0_79] : memref<4x128xf32, #tpu.memory_space<vmem>>, vector<4x128xf32>
    tpu.vector_store %arg16[%c0_78, %c0_79], %177 {strides = array<i32>} : memref<4x128xf32, #tpu.memory_space<vmem>>, vector<4x128xf32>,
    %c0_80 = arith.constant 0 : index
    %179 = memref.load %arg0[%c0_80] : memref<1xi32, #tpu.memory_space<smem>>
    %c0_81 = arith.constant 0 : index
    %c0_82 = arith.constant 0 : index
    %180 = vector.load %arg12[%c0_81, %c0_82] : memref<8x128xf32, #tpu.memory_space<vmem>>, vector<8x128xf32>
    %181 = tpu.iota {dimensions = array<i32: 0>} : vector<8x128xi32>
    %c0_i32 = arith.constant 0 : i32
    %182 = arith.addi %179, %c0_i32 : i32
    %183 = vector.broadcast %182 : i32 to vector<8x128xi32>
    %184 = arith.cmpi eq, %181, %183 : vector<8x128xi32>
    %185 = vector.extract_strided_slice %93 {offsets = [0, 0], sizes = [1, 128], strides = [1, 1]} : vector<2x128xf32> to vector<1x128xf32>
    %186 = vector.shape_cast %185 : vector<1x128xf32> to vector<1x128xf32>
    %187 = vector.broadcast %186 : vector<1x128xf32> to vector<8x128xf32>
    %188 = arith.select %184, %187, %180 : vector<8x128xi1>, vector<8x128xf32>
    %c1_i32 = arith.constant 1 : i32
    %189 = arith.addi %179, %c1_i32 : i32
    %190 = vector.broadcast %189 : i32 to vector<8x128xi32>
    %191 = arith.cmpi eq, %181, %190 : vector<8x128xi32>
    %192 = vector.extract_strided_slice %93 {offsets = [1, 0], sizes = [1, 128], strides = [1, 1]} : vector<2x128xf32> to vector<1x128xf32>
    %193 = vector.shape_cast %192 : vector<1x128xf32> to vector<1x128xf32>
    %194 = vector.broadcast %193 : vector<1x128xf32> to vector<8x128xf32>
    %195 = arith.select %191, %194, %188 : vector<8x128xi1>, vector<8x128xf32>
    %c0_83 = arith.constant 0 : index
    %c0_84 = arith.constant 0 : index
    %196 = vector.load %arg17[%c0_83, %c0_84] : memref<8x128xf32, #tpu.memory_space<vmem>>, vector<8x128xf32>
    tpu.vector_store %arg17[%c0_83, %c0_84], %195 {strides = array<i32>} : memref<8x128xf32, #tpu.memory_space<vmem>>, vector<8x128xf32>,
    %c0_85 = arith.constant 0 : index
    %c0_86 = arith.constant 0 : index
    %197 = vector.load %arg13[%c0_85, %c0_86] : memref<8x4xf32, #tpu.memory_space<vmem>>, vector<8x4xf32>
    %198 = tpu.iota {dimensions = array<i32: 0>} : vector<8x4xi32>
    %c0_i32_87 = arith.constant 0 : i32
    %199 = arith.addi %179, %c0_i32_87 : i32
    %200 = vector.broadcast %199 : i32 to vector<8x4xi32>
    %201 = arith.cmpi eq, %198, %200 : vector<8x4xi32>
    %202 = vector.extract_strided_slice %105 {offsets = [0, 0], sizes = [1, 4], strides = [1, 1]} : vector<2x4xf32> to vector<1x4xf32>
    %203 = vector.shape_cast %202 : vector<1x4xf32> to vector<1x4xf32>
    %204 = vector.broadcast %203 : vector<1x4xf32> to vector<8x4xf32>
    %205 = arith.select %201, %204, %197 : vector<8x4xi1>, vector<8x4xf32>
    %c1_i32_88 = arith.constant 1 : i32
    %206 = arith.addi %179, %c1_i32_88 : i32
    %207 = vector.broadcast %206 : i32 to vector<8x4xi32>
    %208 = arith.cmpi eq, %198, %207 : vector<8x4xi32>
    %209 = vector.extract_strided_slice %105 {offsets = [1, 0], sizes = [1, 4], strides = [1, 1]} : vector<2x4xf32> to vector<1x4xf32>
    %210 = vector.shape_cast %209 : vector<1x4xf32> to vector<1x4xf32>
    %211 = vector.broadcast %210 : vector<1x4xf32> to vector<8x4xf32>
    %212 = arith.select %208, %211, %205 : vector<8x4xi1>, vector<8x4xf32>
    %c0_89 = arith.constant 0 : index
    %c0_90 = arith.constant 0 : index
    %213 = vector.load %arg18[%c0_89, %c0_90] : memref<8x4xf32, #tpu.memory_space<vmem>>, vector<8x4xf32>
    tpu.vector_store %arg18[%c0_89, %c0_90], %212 {strides = array<i32>} : memref<8x4xf32, #tpu.memory_space<vmem>>, vector<8x4xf32>,
    %c0_91 = arith.constant 0 : index
    %c0_92 = arith.constant 0 : index
    %214 = vector.load %arg14[%c0_91, %c0_92] : memref<8x4xf32, #tpu.memory_space<vmem>>, vector<8x4xf32>
    %c0_93 = arith.constant 0 : index
    %c0_94 = arith.constant 0 : index
    %215 = vector.load %arg10[%c0_93, %c0_94] : memref<2x4xf32, #tpu.memory_space<vmem>>, vector<2x4xf32>
    %216 = tpu.iota {dimensions = array<i32: 0>} : vector<8x4xi32>
    %c0_i32_95 = arith.constant 0 : i32
    %217 = arith.addi %179, %c0_i32_95 : i32
    %218 = vector.broadcast %217 : i32 to vector<8x4xi32>
    %219 = arith.cmpi eq, %216, %218 : vector<8x4xi32>
    %220 = vector.extract_strided_slice %215 {offsets = [0, 0], sizes = [1, 4], strides = [1, 1]} : vector<2x4xf32> to vector<1x4xf32>
    %221 = vector.shape_cast %220 : vector<1x4xf32> to vector<1x4xf32>
    %222 = vector.broadcast %221 : vector<1x4xf32> to vector<8x4xf32>
    %223 = arith.select %219, %222, %214 : vector<8x4xi1>, vector<8x4xf32>
    %c1_i32_96 = arith.constant 1 : i32
    %224 = arith.addi %179, %c1_i32_96 : i32
    %225 = vector.broadcast %224 : i32 to vector<8x4xi32>
    %226 = arith.cmpi eq, %216, %225 : vector<8x4xi32>
    %227 = vector.extract_strided_slice %215 {offsets = [1, 0], sizes = [1, 4], strides = [1, 1]} : vector<2x4xf32> to vector<1x4xf32>
    %228 = vector.shape_cast %227 : vector<1x4xf32> to vector<1x4xf32>
    %229 = vector.broadcast %228 : vector<1x4xf32> to vector<8x4xf32>
    %230 = arith.select %226, %229, %223 : vector<8x4xi1>, vector<8x4xf32>
    %c0_97 = arith.constant 0 : index
    %c0_98 = arith.constant 0 : index
    %231 = vector.load %arg19[%c0_97, %c0_98] : memref<8x4xf32, #tpu.memory_space<vmem>>, vector<8x4xf32>
    tpu.vector_store %arg19[%c0_97, %c0_98], %230 {strides = array<i32>} : memref<8x4xf32, #tpu.memory_space<vmem>>, vector<8x4xf32>,
    %cst_99 = arith.constant 0.000000e+00 : f32
    %232 = vector.broadcast %cst_99 : f32 to vector<2x116xf32>
    %233 = tpu.concatenate %94, %105, %145, %232 in 1 : vector<2x4xf32>, vector<2x4xf32>, vector<2x4xf32>, vector<2x116xf32> -> vector<2x128xf32>
    %234 = tpu.concatenate %82, %93, %233 in 0 : vector<2x128xf32>, vector<2x128xf32>, vector<2x128xf32> -> vector<6x128xf32>
    %c0_100 = arith.constant 0 : index
    %c0_101 = arith.constant 0 : index
    %235 = vector.load %arg15[%c0_100, %c0_101] : memref<6x128xf32, #tpu.memory_space<vmem>>, vector<6x128xf32>
    tpu.vector_store %arg15[%c0_100, %c0_101], %234 {strides = array<i32>} : memref<6x128xf32, #tpu.memory_space<vmem>>, vector<6x128xf32>,
    return
  }
}

</mosaic_0001>

<bundles_post_ra>
// kernel: ins_forward.1
= control target key start
LH: loop header
LB: loop body
LE: loop exit
PB: predicated region body
PF: predicated region fallthrough
CT: control target
= control target key end

     0   :  { %s3624_s0 = inlined_call_operand.<no memory space> [shape: s32[1], index: 0, kind: input, shape index: {}]   ;;  %s3625_s1 = inlined_call_operand.vmem [shape: bf16[2,512,32], index: 1, kind: input, shape index: {}]   ;;  %s3626_s2 = inlined_call_operand.vmem [shape: f32[32,128], index: 2, kind: input, shape index: {}]   ;;  %s3627_s3 = inlined_call_operand.vmem [shape: f32[1,128], index: 3, kind: input, shape index: {}]   ;;  %s3628_s4 = inlined_call_operand.vmem [shape: f32[128,128], index: 4, kind: input, shape index: {}]   ;;  %s3629_s5 = inlined_call_operand.vmem [shape: f32[1,128], index: 5, kind: input, shape index: {}]   ;;  %s3630_s6 = inlined_call_operand.vmem [shape: f32[32,128], index: 6, kind: input, shape index: {}]   ;;  %s3631_s7 = inlined_call_operand.vmem [shape: f32[1,128], index: 7, kind: input, shape index: {}]   ;;  %s3632_s8 = inlined_call_operand.vmem [shape: f32[128,128], index: 8, kind: input, shape index: {}]   ;;  %s3633_s9 = inlined_call_operand.vmem [shape: f32[1,128], index: 9, kind: input, shape index: {}]   ;;  %s3634_s10 = inlined_call_operand.vmem [shape: f32[2,4], index: 10, kind: input, shape index: {}]   ;;  %s3635_s11 = inlined_call_operand.vmem [shape: f32[4,128], index: 11, kind: input, shape index: {}]   ;;  %s3636_s12 = inlined_call_operand.vmem [shape: f32[8,128], index: 12, kind: input, shape index: {}]   ;;  %s3637_s13 = inlined_call_operand.vmem [shape: f32[8,4], index: 13, kind: input, shape index: {}]   ;;  %s3638_s14 = inlined_call_operand.vmem [shape: f32[8,4], index: 14, kind: input, shape index: {}]   ;;  %s3639_s15 = inlined_call_operand.vmem [shape: f32[6,128], index: 15, kind: output, shape index: {0}]   ;;  %s3640_s16 = inlined_call_operand.hbm [shape: f32[4,128], index: 16, kind: output, shape index: {1}]   ;;  %s3641_s17 = inlined_call_operand.hbm [shape: f32[8,128], index: 17, kind: output, shape index: {2}]   ;;  %s3642_s18 = inlined_call_operand.vmem [shape: f32[8,4], index: 18, kind: output, shape index: {3}]   ;;  %s3643_s19 = inlined_call_operand.vmem [shape: f32[8,4], index: 19, kind: output, shape index: {4}]   ;;  %s3644_s20 = inlined_call_operand.hbm [shape: f32[32,128], index: 20, kind: output, shape index: {5}]   ;;  %s3645_s21 = inlined_call_operand.hbm [shape: f32[1,128], index: 21, kind: output, shape index: {6}]   ;;  %s3646_s22 = inlined_call_operand.hbm [shape: f32[128,128], index: 22, kind: output, shape index: {7}]   ;;  %s3647_s23 = inlined_call_operand.hbm [shape: f32[1,128], index: 23, kind: output, shape index: {8}]  }
   0x1   :  { %3661 = sst [smem:[#allocation33_spill]] %s3624_s0 }
   0x2   :  { %3662 = sst [smem:[#allocation34_spill]] %s3625_s1 }
   0x3   :  { %3663 = sst [smem:[#allocation35_spill]] %s3626_s2 }
   0x4   :  { %3664 = sst [smem:[#allocation36_spill]] %s3627_s3 }
   0x5   :  { %3665 = sst [smem:[#allocation37_spill]] %s3628_s4 }
   0x6   :  { %3666 = sst [smem:[#allocation38_spill]] %s3629_s5 }
   0x7   :  { %3667 = sst [smem:[#allocation39_spill]] %s3630_s6 }
   0x8   :  { %3668 = sst [smem:[#allocation40_spill]] %s3631_s7 }
   0x9   :  { %30 = vsyncpa [#allocation4], 0 }
   0xa   :  { %31 = vsyncpa [#allocation6], 0 }
   0xb   :  { %32 = vsyncpa [#allocation9], 0  ;;  %s3669_s24 = sld [smem:[#allocation35_spill]] }
   0xc   :  { %s3670_s28 = sld [smem:[#allocation39_spill]] }
   0xd   :  { %s3671_s1 = sld [smem:[#allocation34_spill]] }
  0x11   :  { %v263_v0 = vld [vmem:[%s3669_s24 + $0x10] sm:$0xff]  ;;  %v264_v1 = vld [vmem:[%s3669_s24 + $0x18] sm:$0xff]  ;;  %v261_v2 = vld [vmem:[%s3669_s24] sm:$0xff] }
  0x12   :  { %v267_v3 = vpack.c.bf16 %v264_v1, %v263_v0  ;;  %v262_v4 = vld [vmem:[%s3669_s24 + $0x8] sm:$0xff]  ;;  %v67_v5 = vld [vmem:[%s3670_s28 + $0x10] sm:$0xff]  ;;  %v68_v6 = vld [vmem:[%s3670_s28 + $0x18] sm:$0xff]  ;;  %v79_v7 = vmul.f32 0.001, %v263_v0 }
  0x13   :  { %v71_v8 = vmul.f32 0.999, %v67_v5  ;;  %v72_v9 = vmul.f32 0.999, %v68_v6  ;;  %v80_v10 = vmul.f32 0.001, %v264_v1  ;;  %v266_v11 = vpack.c.bf16 %v262_v4, %v261_v2 }
  0x14   :  { %534 = vmatpush.bf16.msra.mxu0 %v267_v3  ;;  %v65_v12 = vld [vmem:[%s3670_s28] sm:$0xff]  ;;  %v66_v13 = vld [vmem:[%s3670_s28 + $0x8] sm:$0xff]  ;;  %v77_v14 = vmul.f32 0.001, %v261_v2  ;;  %2360 = vmatpush.bf16.msra.mxu2 %v267_v3  ;;  %v78_v19 = vmul.f32 0.001, %v262_v4 }
  0x15   :  { %v83_v15 = vadd.f32 %v79_v7, %v71_v8  ;;  %v84_v16 = vadd.f32 %v80_v10, %v72_v9  ;;  %v69_v17 = vmul.f32 0.999, %v65_v12  ;;  %v70_v18 = vmul.f32 0.999, %v66_v13  ;;  %v2296_v21 = vld [vmem:[%s3671_s1] sm:$0xff] }
  0x17   :  { %177 = vst [vmem:[#allocation7 + $0x10] sm:$0xff] %v83_v15  ;;  %v910_v20 = vpack.c.bf16 %v84_v16, %v83_v15  ;;  %v81_v22 = vadd.f32 %v77_v14, %v69_v17 }
  0x18   :  { %33 = vsyncpa [#allocation12], 0  ;;  %535 = vmatpush.bf16.msra.mxu0 %v266_v11  ;;  %178 = vst [vmem:[#allocation7 + $0x18] sm:$0xff] %v84_v16  ;;  %vm431_vm0 = vcmask 261120   ;;  %v82_v23 = vadd.f32 %v78_v19, %v70_v18  ;;  %2361 = vmatpush.bf16.msra.mxu2 %v266_v11  ;;  %v2328_v25 = vld [vmem:[%s3671_s1 + $0x100] sm:$0xff]  ;;  %v2297_v26 = vld [vmem:[%s3671_s1 + $0x8] sm:$0xff] }
  0x19   :  { %1176 = vmatpush.bf16.msra.mxu1 %v910_v20  ;;  %175 = vst [vmem:[#allocation7] sm:$0xff] %v81_v22  ;;  %2362 = vmatpush.bf16.msra.mxu3 %v910_v20  ;;  %v2329_v27 = vld [vmem:[%s3671_s1 + $0x108] sm:$0xff]  ;;  %v2298_v28 = vld [vmem:[%s3671_s1 + $0x10] sm:$0xff]  ;;  %v2299_v30 = vld [vmem:[%s3671_s1 + $0x18] sm:$0xff]  ;;  %s3672_s30 = sld [smem:[#allocation40_spill]]  ;;  %vm1481_vm2 = vcmask 1041409  }
  0x1a   :  { %176 = vst [vmem:[#allocation7 + $0x8] sm:$0xff] %v82_v23  ;;  %v909_v24 = vpack.c.bf16 %v82_v23, %v81_v22  ;;  %v2330_v29 = vld [vmem:[%s3671_s1 + $0x110] sm:$0xff]  ;;  %v2313_v31 = vld [vmem:[%s3671_s1 + $0x88] sm:$0xff]  ;;  %v2331_v33 = vld [vmem:[%s3671_s1 + $0x118] sm:$0xff]  ;;  %s3673_s5 = sld [smem:[#allocation36_spill]]  ;;  %vm1486_vm3 = vcmask 1043459  }
  0x1b   :  { %2040 = vmatmul.msk.bf16.vlgmr.msra.gmra.mxu0 %vm431_vm0, %v2296_v21  ;;  %v2345_v32 = vld [vmem:[%s3671_s1 + $0x188] sm:$0xff]  ;;  %2057 = vmatmul.msk.bf16.vlgmr.msra.gmra.mxu2 %vm431_vm0, %v2313_v31  ;;  %v2300_v34 = vld [vmem:[%s3671_s1 + $0x20] sm:$0xff]  ;;  %v2314_v35 = vld [vmem:[%s3671_s1 + $0x90] sm:$0xff]  ;;  %s3674_s0 = sld [smem:[#allocation37_spill]]  ;;  %vm1489_vm4 = vcmask 1041408   ;;  %vm1600_vm6 = vcmask 91200  }
  0x1c   :  { %v2346_v36 = vld [vmem:[%s3671_s1 + $0x190] sm:$0xff]  ;;  %v2332_v37 = vld [vmem:[%s3671_s1 + $0x120] sm:$0xff]  ;;  %v2301_v38 = vld [vmem:[%s3671_s1 + $0x28] sm:$0xff]  ;;  %vm1611_vm7 = vcmask 25600   ;;  %vm1581_vm14 = vcmask 1043458   ;;  %s3708_s2 = sld [smem:[#allocation33_spill]] }
  0x1d   :  { %1177 = vmatpush.bf16.msra.mxu1 %v909_v24  ;;  %2363 = vmatpush.bf16.msra.mxu3 %v909_v24  ;;  %v2315_v39 = vld [vmem:[%s3671_s1 + $0x98] sm:$0xff]  ;;  %v2333_v41 = vld [vmem:[%s3671_s1 + $0x128] sm:$0xff]  ;;  %v2302_v42 = vld [vmem:[%s3671_s1 + $0x30] sm:$0xff]  ;;  %s1822_s28 = sshll.u32 %s3641_s17, 4  ;;  %s2555_s29 = smov [#allocation5]   ;;  %s1823_s28 = int_to_ptr.hbm [resolvable:$true] %s1822_s28 }
  0x1e   :  { %v2347_v40 = vld [vmem:[%s3671_s1 + $0x198] sm:$0xff]  ;;  %v2334_v48 = vld [vmem:[%s3671_s1 + $0x130] sm:$0xff]  ;;  %v2316_v49 = vld [vmem:[%s3671_s1 + $0xa0] sm:$0xff]  ;;  %s1820_s3 = sshll.u32 %s2555_s29, 4  ;;  %s2556_s4 = smov [#allocation8]   ;;  %s1821_s3 = int_to_ptr.vmem [resolvable:$true] %s1820_s3 }
  0x1f   :  { %v85_v43 = vld [vmem:[%s3672_s30] sm:$0x1]  ;;  %v2303_v51 = vld [vmem:[%s3671_s1 + $0x38] sm:$0xff]  ;;  %v2317_v53 = vld [vmem:[%s3671_s1 + $0xa8] sm:$0xff]  ;;  %s2554_s30 = smov 8   ;;  %s1848_s24 = sshll.u32 %s2556_s4, 4  ;;  %s1849_s24 = int_to_ptr.vmem [resolvable:$true] %s1848_s24 }
  0x20   :  { %2264 = vmatmul.msk.bf16.vlgmr.msra.gmra.mxu1 %vm431_vm0, %v2328_v25  ;;  %2281 = vmatmul.msk.bf16.vlgmr.msra.gmra.mxu3 %vm431_vm0, %v2345_v32  ;;  %v87_v44 = vld [vmem:[%s3673_s5] sm:$0x1]  ;;  %v86_v45 = vmul.f32 0.999, %v85_v43  ;;  %v2335_v52 = vld [vmem:[%s3671_s1 + $0x138] sm:$0xff]  ;;  %v2349_v54 = vld [vmem:[%s3671_s1 + $0x1a8] sm:$0xff] }
  0x21   :  { %v88_v46 = vmul.f32 0.001, %v87_v44  ;;  %v2348_v50 = vld [vmem:[%s3671_s1 + $0x1a0] sm:$0xff]  ;;  %v2318_v60 = vld [vmem:[%s3671_s1 + $0xb0] sm:$0xff]  ;;  %v2305_v8 = vld [vmem:[%s3671_s1 + $0x48] sm:$0xff]  ;;  %s1850_s26 = sshll.u32 %s3645_s21, 4  ;;  %s1851_s26 = int_to_ptr.hbm [resolvable:$true] %s1850_s26 }
  0x22   :  { %v2304_v55 = vld [vmem:[%s3671_s1 + $0x40] sm:$0xff]  ;;  %v2350_v61 = vld [vmem:[%s3671_s1 + $0x1b0] sm:$0xff]  ;;  %v2337_v15 = vld [vmem:[%s3671_s1 + $0x148] sm:$0xff]  ;;  %s2558_s17 = smov [#allocation7]   ;;  %s2559_s27 = smov 128  }
  0x23   :  { %v89_v47 = vadd.f32 %v88_v46, %v86_v45  ;;  %v2825_v58 = vld [vmem:[%s3673_s5] ss:$0 sm:$0xff]  ;;  %v2319_v16 = vld [vmem:[%s3671_s1 + $0xb8] sm:$0xff]  ;;  %s2560_s21 = smov [#allocation10]   ;;  %s1874_s29 = sshll.u32 %s3647_s23, 4  ;;  %s1875_s29 = int_to_ptr.hbm [resolvable:$true] %s1874_s29 }
  0x24   :  { %v2336_v59 = vld [vmem:[%s3671_s1 + $0x140] sm:$0xff]  ;;  %v2351_v17 = vld [vmem:[%s3671_s1 + $0x1b8] sm:$0xff]  ;;  %s1811_s6 = sshll.u32 %s3640_s16, 4  ;;  %s1812_s6 = int_to_ptr.hbm [resolvable:$true] %s1811_s6 }
  0x25   :  { %179 = vst [vmem:[#allocation8] sm:$0x1] %v89_v47  ;;  %v2820_v57 = vperm.slane %v89_v47, 0 }
  0x26   :  { %1853 = dma.vmem_to_hbm [thread:$0]  %s1849_s24, 16, %s1851_s26, [#allocation9]  }
  0x27   :  { %s2562_s26 = smov [#allocation3]  }
  0x2b   :  { %2041 = vmatmul.msk.bf16.gmra.mxu0 %vm431_vm0, %v2297_v26  ;;  %2058 = vmatmul.msk.bf16.gmra.mxu2 %vm431_vm0, %v2314_v35  ;;  %v2338_v35 = vld [vmem:[%s3671_s1 + $0x150] sm:$0xff] }
  0x30   :  { %2265 = vmatmul.msk.bf16.gmra.mxu1 %vm431_vm0, %v2329_v27  ;;  %2282 = vmatmul.msk.bf16.gmra.mxu3 %vm431_vm0, %v2346_v36  ;;  %v2320_v36 = vld [vmem:[%s3671_s1 + $0xc0] sm:$0xff] }
  0x3b   :  { %2042 = vmatmul.msk.bf16.gmra.mxu0 %vm431_vm0, %v2298_v28  ;;  %2059 = vmatmul.msk.bf16.gmra.mxu2 %vm431_vm0, %v2315_v39 }
  0x40   :  { %2266 = vmatmul.msk.bf16.gmra.mxu1 %vm431_vm0, %v2330_v29  ;;  %2283 = vmatmul.msk.bf16.gmra.mxu3 %vm431_vm0, %v2347_v40  ;;  %v2306_v29 = vld [vmem:[%s3671_s1 + $0x50] sm:$0xff] }
  0x4b   :  { %2043 = vmatmul.msk.bf16.gmra.mxu0 %vm431_vm0, %v2299_v30  ;;  %2060 = vmatmul.msk.bf16.gmra.mxu2 %vm431_vm0, %v2316_v49  ;;  %v2307_v49 = vld [vmem:[%s3671_s1 + $0x58] sm:$0xff] }
  0x50   :  { %2267 = vmatmul.msk.bf16.gmra.mxu1 %vm431_vm0, %v2331_v33  ;;  %2284 = vmatmul.msk.bf16.gmra.mxu3 %vm431_vm0, %v2348_v50 }
  0x5b   :  { %2044 = vmatmul.msk.bf16.gmra.mxu0 %vm431_vm0, %v2300_v34  ;;  %2061 = vmatmul.msk.bf16.gmra.mxu2 %vm431_vm0, %v2317_v53 }
  0x60   :  { %2268 = vmatmul.msk.bf16.gmra.mxu1 %vm431_vm0, %v2332_v37  ;;  %2285 = vmatmul.msk.bf16.gmra.mxu3 %vm431_vm0, %v2349_v54  ;;  %v2352_v37 = vld [vmem:[%s3671_s1 + $0x1c0] sm:$0xff] }
  0x6b   :  { %2045 = vmatmul.msk.bf16.gmra.mxu0 %vm431_vm0, %v2301_v38  ;;  %2062 = vmatmul.msk.bf16.gmra.mxu2 %vm431_vm0, %v2318_v60 }
  0x70   :  { %2269 = vmatmul.msk.bf16.gmra.mxu1 %vm431_vm0, %v2333_v41  ;;  %2286 = vmatmul.msk.bf16.gmra.mxu3 %vm431_vm0, %v2350_v61 }
  0x7b   :  { %2046 = vmatmul.msk.bf16.gmra.mxu0 %vm431_vm0, %v2302_v42  ;;  %2063 = vmatmul.msk.bf16.gmra.mxu2 %vm431_vm0, %v2319_v16 }
  0x80   :  { %2270 = vmatmul.msk.bf16.gmra.mxu1 %vm431_vm0, %v2334_v48  ;;  %2287 = vmatmul.msk.bf16.gmra.mxu3 %vm431_vm0, %v2351_v17 }
  0x8b   :  { %2047 = vmatmul.msk.bf16.gmra.mxu0 %vm431_vm0, %v2303_v51  ;;  %2064 = vmatmul.msk.bf16.gmra.mxu2 %vm431_vm0, %v2320_v36  ;;  %v2309_v36 = vld [vmem:[%s3671_s1 + $0x68] sm:$0xff] }
  0x90   :  { %2271 = vmatmul.msk.bf16.gmra.mxu1 %vm431_vm0, %v2335_v52  ;;  %2288 = vmatmul.msk.bf16.gmra.mxu3 %vm431_vm0, %v2352_v37 }
  0x98   :  { %v537_v56 = vpop.f32.mrf.mxu0 }
  0x99   :  { %v538_v0 = vadd.f32 %v2825_v58, %v537_v56  ;;  %v2321_v56 = vld [vmem:[%s3671_s1 + $0xc8] sm:$0xff] }
  0x9b   :  { %2048 = vmatmul.msk.bf16.gmra.mxu0 %vm431_vm0, %v2304_v55  ;;  %v697_v3 = vmax.f32 %v538_v0, 0.0  ;;  %v2339_v55 = vld [vmem:[%s3671_s1 + $0x158] sm:$0xff]  ;;  %2065 = vmatmul.msk.bf16.gmra.mxu2 %vm431_vm0, %v2321_v56 }
  0x9d   :  { %v1179_v62 = vpop.f32.mrf.mxu1 }
  0x9e   :  { %v1180_v63 = vadd.f32 %v1179_v62, %v2820_v57 }
  0xa0   :  { %2272 = vmatmul.msk.bf16.gmra.mxu1 %vm431_vm0, %v2336_v59  ;;  %v539_v1 = vpop.f32.mrf.mxu0  ;;  %v1339_v9 = vmax.f32 %v1180_v63, 0.0  ;;  %v2353_v59 = vld [vmem:[%s3671_s1 + $0x1c8] sm:$0xff] }
  0xa1   :  { %v540_v2 = vadd.f32 %v2825_v58, %v539_v1  ;;  %2289 = vmatmul.msk.bf16.gmra.mxu3 %vm431_vm0, %v2353_v59 }
  0xa3   :  { %v698_v4 = vmax.f32 %v540_v2, 0.0  ;;  %v2903_v2 = vpop.f32.mrf.mxu2 }
  0xa5   :  { %v761_v5 = vadd.f32 %v698_v4, %v697_v3  ;;  %v1181_v6 = vpop.f32.mrf.mxu1  ;;  %v1264_v3 = vpop.f32.mrf.mxu3 }
  0xa6   :  { %v1182_v7 = vadd.f32 %v1181_v6, %v2820_v57 }
  0xa8   :  { %v1340_v10 = vmax.f32 %v1182_v7, 0.0  ;;  %v542_v11 = vpop.f32.mrf.mxu0 }
  0xa9   :  { %v543_v12 = vadd.f32 %v2825_v58, %v542_v11 }
  0xaa   :  { %v1403_v13 = vadd.f32 %v1340_v10, %v1339_v9  ;;  %v2308_v10 = vld [vmem:[%s3671_s1 + $0x60] sm:$0xff] }
  0xab   :  { %v699_v14 = vmax.f32 %v543_v12, 0.0  ;;  %2049 = vmatmul.msk.bf16.gmra.mxu0 %vm431_vm0, %v2305_v8  ;;  %v2906_v8 = vadd.f32 %v1264_v3, %v2820_v57 }
  0xad   :  { %v762_v18 = vadd.f32 %v761_v5, %v699_v14  ;;  %v1184_v19 = vpop.f32.mrf.mxu1  ;;  %v2913_v14 = vpop.f32.mrf.mxu2 }
  0xae   :  { %v1185_v20 = vadd.f32 %v1184_v19, %v2820_v57  ;;  %v2340_v19 = vld [vmem:[%s3671_s1 + $0x160] sm:$0xff] }
  0xb0   :  { %v1341_v21 = vmax.f32 %v1185_v20, 0.0  ;;  %2273 = vmatmul.msk.bf16.gmra.mxu1 %vm431_vm0, %v2337_v15  ;;  %v544_v22 = vpop.f32.mrf.mxu0  ;;  %v1266_v15 = vpop.f32.mrf.mxu3  ;;  %v2322_v20 = vld [vmem:[%s3671_s1 + $0xd0] sm:$0xff] }
  0xb1   :  { %v545_v23 = vadd.f32 %v2825_v58, %v544_v22  ;;  %v2916_v17 = vadd.f32 %v1266_v15, %v2820_v57  ;;  %2066 = vmatmul.msk.bf16.gmra.mxu2 %vm431_vm0, %v2322_v20  ;;  %v2324_v15 = vld [vmem:[%s3671_s1 + $0xe0] sm:$0xff] }
  0xb2   :  { %v1404_v24 = vadd.f32 %v1403_v13, %v1341_v21  ;;  %v2354_v21 = vld [vmem:[%s3671_s1 + $0x1d0] sm:$0xff] }
  0xb3   :  { %v700_v25 = vmax.f32 %v545_v23, 0.0  ;;  %2290 = vmatmul.msk.bf16.gmra.mxu3 %vm431_vm0, %v2354_v21 }
  0xb5   :  { %v763_v26 = vadd.f32 %v762_v18, %v700_v25  ;;  %v1186_v27 = vpop.f32.mrf.mxu1 }
  0xb6   :  { %v1187_v28 = vadd.f32 %v1186_v27, %v2820_v57 }
  0xb8   :  { %v1342_v30 = vmax.f32 %v1187_v28, 0.0  ;;  %v547_v31 = vpop.f32.mrf.mxu0  ;;  %v2933_v28 = vpop.f32.mrf.mxu2 }
  0xb9   :  { %v548_v32 = vadd.f32 %v2825_v58, %v547_v31 }
  0xba   :  { %v1405_v33 = vadd.f32 %v1404_v24, %v1342_v30 }
  0xbb   :  { %v701_v34 = vmax.f32 %v548_v32, 0.0  ;;  %2050 = vmatmul.msk.bf16.gmra.mxu0 %vm431_vm0, %v2306_v29  ;;  %v1269_v29 = vpop.f32.mrf.mxu3 }
  0xbd   :  { %v764_v38 = vadd.f32 %v763_v26, %v701_v34  ;;  %v1189_v39 = vpop.f32.mrf.mxu1  ;;  %v2936_v34 = vadd.f32 %v1269_v29, %v2820_v57 }
  0xbe   :  { %v1190_v40 = vadd.f32 %v1189_v39, %v2820_v57 }
  0xc0   :  { %v1343_v41 = vmax.f32 %v1190_v40, 0.0  ;;  %2274 = vmatmul.msk.bf16.gmra.mxu1 %vm431_vm0, %v2338_v35  ;;  %v549_v42 = vpop.f32.mrf.mxu0  ;;  %v2943_v40 = vpop.f32.mrf.mxu2 }
  0xc1   :  { %v550_v43 = vadd.f32 %v2825_v58, %v549_v42 }
  0xc2   :  { %v1406_v44 = vadd.f32 %v1405_v33, %v1343_v41 }
  0xc3   :  { %v702_v45 = vmax.f32 %v550_v43, 0.0  ;;  %v1271_v41 = vpop.f32.mrf.mxu3  ;;  %v2948_v43 = vld [vmem:[%s3674_s0 + $0x78] sm:$0xff] }
  0xc4   :  { %1507 = vmatpush.msrb.mxu2 %v2948_v43 }
  0xc5   :  { %v765_v46 = vadd.f32 %v764_v38, %v702_v45  ;;  %v1191_v47 = vpop.f32.mrf.mxu1 }
  0xc6   :  { %v1192_v48 = vadd.f32 %v1191_v47, %v2820_v57  ;;  %v2323_v47 = vld [vmem:[%s3671_s1 + $0xd8] sm:$0xff] }
  0xc7   :  { %2067 = vmatmul.msk.bf16.gmra.mxu2 %vm431_vm0, %v2323_v47  ;;  %v2325_v47 = vld [vmem:[%s3671_s1 + $0xe8] sm:$0xff] }
  0xc8   :  { %v1344_v50 = vmax.f32 %v1192_v48, 0.0  ;;  %v552_v51 = vpop.f32.mrf.mxu0  ;;  %v2355_v48 = vld [vmem:[%s3671_s1 + $0x1d8] sm:$0xff] }
  0xc9   :  { %v553_v52 = vadd.f32 %v2825_v58, %v552_v51  ;;  %2291 = vmatmul.msk.bf16.gmra.mxu3 %vm431_vm0, %v2355_v48  ;;  %v2357_v48 = vld [vmem:[%s3671_s1 + $0x1e8] sm:$0xff] }
  0xca   :  { %v1407_v53 = vadd.f32 %v1406_v44, %v1344_v50  ;;  %v2951_v44 = vadd.f32 %v1271_v41, %v2820_v57  ;;  %v3019_v41 = vld [vmem:[%s3674_s0 + $0x68] sm:$0xff] }
  0xcb   :  { %v703_v54 = vmax.f32 %v553_v52, 0.0  ;;  %2051 = vmatmul.msk.bf16.gmra.mxu0 %vm431_vm0, %v2307_v49  ;;  %v1274_v56 = vpop.f32.mrf.mxu3 }
  0xcd   :  { %v766_v60 = vadd.f32 %v765_v46, %v703_v54  ;;  %v1194_v61 = vpop.f32.mrf.mxu1  ;;  %v2341_v46 = vld [vmem:[%s3671_s1 + $0x168] sm:$0xff] }
  0xce   :  { %v1195_v62 = vadd.f32 %v1194_v61, %v2820_v57 }
  0xd0   :  { %v1345_v63 = vmax.f32 %v1195_v62, 0.0  ;;  %2275 = vmatmul.msk.bf16.gmra.mxu1 %vm431_vm0, %v2339_v55  ;;  %v554_v0 = vpop.f32.mrf.mxu0  ;;  %v2969_v55 = vpop.f32.mrf.mxu2 }
  0xd1   :  { %v555_v1 = vadd.f32 %v2825_v58, %v554_v0 }
  0xd2   :  { %v1408_v4 = vadd.f32 %v1407_v53, %v1345_v63  ;;  %v2972_v63 = vadd.f32 %v1274_v56, %v2820_v57 }
  0xd3   :  { %v704_v5 = vmax.f32 %v555_v1, 0.0  ;;  %v2310_v1 = vld [vmem:[%s3671_s1 + $0x70] sm:$0xff] }
  0xd5   :  { %v767_v6 = vadd.f32 %v766_v60, %v704_v5  ;;  %v1196_v7 = vpop.f32.mrf.mxu1 }
  0xd6   :  { %v1197_v9 = vadd.f32 %v1196_v7, %v2820_v57  ;;  %v1276_v7 = vpop.f32.mrf.mxu3 }
  0xd7   :  { %2068 = vmatmul.msk.bf16.gmra.mxu2 %vm431_vm0, %v2324_v15 }
  0xd8   :  { %v1346_v11 = vmax.f32 %v1197_v9, 0.0  ;;  %v557_v12 = vpop.f32.mrf.mxu0 }
  0xd9   :  { %v558_v13 = vadd.f32 %v2825_v58, %v557_v12 }
  0xda   :  { %v1409_v16 = vadd.f32 %v1408_v4, %v1346_v11  ;;  %v2987_v11 = vadd.f32 %v1276_v7, %v2820_v57 }
  0xdb   :  { %v705_v18 = vmax.f32 %v558_v13, 0.0  ;;  %2052 = vmatmul.msk.bf16.gmra.mxu0 %vm431_vm0, %v2308_v10  ;;  %v2984_v10 = vld [vmem:[%s3674_s0 + $0x70] sm:$0xff] }
  0xdc   :  { %1508 = vmatpush.msrb.mxu2 %v2984_v10  ;;  %v2342_v13 = vld [vmem:[%s3671_s1 + $0x170] sm:$0xff] }
  0xdd   :  { %v768_v22 = vadd.f32 %v767_v6, %v705_v18  ;;  %v1199_v23 = vpop.f32.mrf.mxu1  ;;  %v2979_v6 = vpop.f32.mrf.mxu2 }
  0xde   :  { %v1200_v24 = vadd.f32 %v1199_v23, %v2820_v57  ;;  %1509 = vmatpush.msrb.mxu2 %v3019_v41 }
  0xe0   :  { %v1347_v25 = vmax.f32 %v1200_v24, 0.0  ;;  %2276 = vmatmul.msk.bf16.gmra.mxu1 %vm431_vm0, %v2340_v19  ;;  %v559_v26 = vpop.f32.mrf.mxu0 }
  0xe1   :  { %v560_v27 = vadd.f32 %v2825_v58, %v559_v26 }
  0xe2   :  { %v1410_v30 = vadd.f32 %v1409_v16, %v1347_v25  ;;  %v2356_v16 = vld [vmem:[%s3671_s1 + $0x1e0] sm:$0xff]  ;;  %v3007_v25 = vpop.f32.mrf.mxu3 }
  0xe3   :  { %v706_v31 = vmax.f32 %v560_v27, 0.0  ;;  %2292 = vmatmul.msk.bf16.gmra.mxu3 %vm431_vm0, %v2356_v16  ;;  %v3055_v16 = vld [vmem:[%s3674_s0 + $0x60] sm:$0xff] }
  0xe4   :  { %1510 = vmatpush.msrb.mxu2 %v3055_v16 }
  0xe5   :  { %v769_v32 = vadd.f32 %v768_v22, %v706_v31  ;;  %v1201_v33 = vpop.f32.mrf.mxu1  ;;  %v3005_v24 = vpop.f32.mrf.mxu2 }
  0xe6   :  { %v1202_v35 = vadd.f32 %v1201_v33, %v2820_v57 }
  0xe7   :  { %2069 = vmatmul.msk.bf16.gmra.mxu2 %vm431_vm0, %v2325_v47 }
  0xe8   :  { %v1348_v37 = vmax.f32 %v1202_v35, 0.0  ;;  %v562_v38 = vpop.f32.mrf.mxu0 }
  0xe9   :  { %v563_v39 = vadd.f32 %v2825_v58, %v562_v38 }
  0xea   :  { %v1411_v42 = vadd.f32 %v1410_v30, %v1348_v37  ;;  %v1281_v38 = vpop.f32.mrf.mxu3 }
  0xeb   :  { %v707_v45 = vmax.f32 %v563_v39, 0.0  ;;  %2053 = vmatmul.msk.bf16.gmra.mxu0 %vm431_vm0, %v2309_v36 }
  0xed   :  { %v770_v49 = vadd.f32 %v769_v32, %v707_v45  ;;  %v1204_v50 = vpop.f32.mrf.mxu1  ;;  %v2311_v32 = vld [vmem:[%s3671_s1 + $0x78] sm:$0xff]  ;;  %v3014_v37 = vpop.f32.mrf.mxu2 }
  0xee   :  { %v1205_v51 = vadd.f32 %v1204_v50, %v2820_v57 }
  0xf0   :  { %v1349_v52 = vmax.f32 %v1205_v51, 0.0  ;;  %2277 = vmatmul.msk.bf16.gmra.mxu1 %vm431_vm0, %v2341_v46  ;;  %v564_v53 = vpop.f32.mrf.mxu0  ;;  %v2343_v46 = vld [vmem:[%s3671_s1 + $0x178] sm:$0xff] }
  0xf1   :  { %v565_v54 = vadd.f32 %v2825_v58, %v564_v53 }
  0xf2   :  { %v1412_v59 = vadd.f32 %v1411_v42, %v1349_v52  ;;  %v3022_v42 = vadd.f32 %v1281_v38, %v2820_v57 }
  0xf3   :  { %v708_v60 = vmax.f32 %v565_v54, 0.0  ;;  %2293 = vmatmul.msk.bf16.gmra.mxu3 %vm431_vm0, %v2357_v48 }
  0xf5   :  { %v771_v61 = vadd.f32 %v770_v49, %v708_v60  ;;  %v1206_v62 = vpop.f32.mrf.mxu1  ;;  %v3040_v56 = vpop.f32.mrf.mxu2 }
  0xf6   :  { %v1207_v0 = vadd.f32 %v1206_v62, %v2820_v57 }
  0xf8   :  { %v1350_v3 = vmax.f32 %v1207_v0, 0.0  ;;  %v567_v4 = vpop.f32.mrf.mxu0 }
  0xf9   :  { %v568_v5 = vadd.f32 %v2825_v58, %v567_v4  ;;  %v2312_v4 = vld [vmem:[%s3671_s1 + $0x80] sm:$0xff] }
  0xfa   :  { %v1413_v9 = vadd.f32 %v1412_v59, %v1350_v3  ;;  %v1284_v59 = vpop.f32.mrf.mxu3 }
  0xfb   :  { %v709_v12 = vmax.f32 %v568_v5, 0.0  ;;  %2054 = vmatmul.msk.bf16.gmra.mxu0 %vm431_vm0, %v2310_v1  ;;  %v3043_v1 = vadd.f32 %v1284_v59, %v2820_v57 }
  0xfd   :  { %v772_v18 = vadd.f32 %v771_v61, %v709_v12  ;;  %v1209_v19 = vpop.f32.mrf.mxu1  ;;  %v3050_v12 = vpop.f32.mrf.mxu2 }
  0xfe   :  { %v1210_v20 = vadd.f32 %v1209_v19, %v2820_v57 }
 0x100   :  { %v1351_v21 = vmax.f32 %v1210_v20, 0.0  ;;  %2278 = vmatmul.msk.bf16.gmra.mxu1 %vm431_vm0, %v2342_v13  ;;  %v569_v22 = vpop.f32.mrf.mxu0  ;;  %v2344_v20 = vld [vmem:[%s3671_s1 + $0x180] sm:$0xff] }
 0x101   :  { %v570_v23 = vadd.f32 %v2825_v58, %v569_v22  ;;  %v2358_v22 = vld [vmem:[%s3671_s1 + $0x1f0] sm:$0xff] }
 0x102   :  { %v1414_v26 = vadd.f32 %v1413_v9, %v1351_v21  ;;  %v1286_v13 = vpop.f32.mrf.mxu3  ;;  %v2326_v21 = vld [vmem:[%s3671_s1 + $0xf0] sm:$0xff] }
 0x103   :  { %v710_v27 = vmax.f32 %v570_v23, 0.0  ;;  %2070 = vmatmul.msk.bf16.gmra.mxu2 %vm431_vm0, %v2326_v21  ;;  %2294 = vmatmul.msk.bf16.gmra.mxu3 %vm431_vm0, %v2358_v22 }
 0x105   :  { %v773_v29 = vadd.f32 %v772_v18, %v710_v27  ;;  %v1211_v30 = vpop.f32.mrf.mxu1  ;;  %v3058_v18 = vadd.f32 %v1286_v13, %v2820_v57 }
 0x106   :  { %v1212_v31 = vadd.f32 %v1211_v30, %v2820_v57 }
 0x108   :  { %v1352_v33 = vmax.f32 %v1212_v31, 0.0  ;;  %v572_v35 = vpop.f32.mrf.mxu0 }
 0x109   :  { %v573_v36 = vadd.f32 %v2825_v58, %v572_v35 }
 0x10a   :  { %v1415_v39 = vadd.f32 %v1414_v26, %v1352_v33  ;;  %v1289_v33 = vpop.f32.mrf.mxu3 }
 0x10b   :  { %v711_v45 = vmax.f32 %v573_v36, 0.0  ;;  %2055 = vmatmul.msk.bf16.gmra.mxu0 %vm431_vm0, %v2311_v32  ;;  %v3076_v32 = vpop.f32.mrf.mxu2 }
 0x10d   :  { %v774_v49 = vadd.f32 %v773_v29, %v711_v45  ;;  %v1214_v50 = vpop.f32.mrf.mxu1  ;;  %v3079_v45 = vadd.f32 %v1289_v33, %v2820_v57 }
 0x10e   :  { %v1215_v51 = vadd.f32 %v1214_v50, %v2820_v57 }
 0x110   :  { %v1353_v52 = vmax.f32 %v1215_v51, 0.0  ;;  %2279 = vmatmul.msk.bf16.gmra.mxu1 %vm431_vm0, %v2343_v46  ;;  %v574_v53 = vpop.f32.mrf.mxu0  ;;  %v3084_v46 = vld [vmem:[%s3674_s0 + $0x58] sm:$0xff] }
 0x111   :  { %v575_v54 = vadd.f32 %v2825_v58, %v574_v53  ;;  %1511 = vmatpush.msrb.mxu2 %v3084_v46 }
 0x112   :  { %v1416_v60 = vadd.f32 %v1415_v39, %v1353_v52  ;;  %v1291_v52 = vpop.f32.mrf.mxu3 }
 0x113   :  { %v712_v61 = vmax.f32 %v575_v54, 0.0  ;;  %v3089_v51 = vpop.f32.mrf.mxu2  ;;  %v3092_v54 = vadd.f32 %v1291_v52, %v2820_v57 }
 0x115   :  { %v775_v62 = vadd.f32 %v774_v49, %v712_v61  ;;  %v1216_v0 = vpop.f32.mrf.mxu1  ;;  %v2359_v61 = vld [vmem:[%s3671_s1 + $0x1f8] sm:$0xff] }
 0x116   :  { %v1217_v3 = vadd.f32 %v1216_v0, %v2820_v57  ;;  %2295 = vmatmul.msk.bf16.gmra.mxu3 %vm431_vm0, %v2359_v61 }
 0x118   :  { %v1354_v5 = vmax.f32 %v1217_v3, 0.0  ;;  %v577_v7 = vpop.f32.mrf.mxu0 }
 0x119   :  { %v578_v9 = vadd.f32 %v2825_v58, %v577_v7 }
 0x11a   :  { %v1417_v15 = vadd.f32 %v1416_v60, %v1354_v5  ;;  %v2327_v60 = vld [vmem:[%s3671_s1 + $0xf8] sm:$0xff]  ;;  %v1294_v13 = vpop.f32.mrf.mxu3  ;;  %s1751_s1 = sadd.s32 1, %s3708_s2 }
 0x11b   :  { %v713_v19 = vmax.f32 %v578_v9, 0.0  ;;  %2056 = vmatmul.msk.bf16.gmra.mxu0 %vm431_vm0, %v2312_v4  ;;  %2071 = vmatmul.msk.bf16.gmra.mxu2 %vm431_vm0, %v2327_v60  ;;  %v3104_v9 = vpop.f32.mrf.mxu2  ;;  %v3107_v22 = vadd.f32 %v1294_v13, %v2820_v57 }
 0x11d   :  { %v776_v23 = vadd.f32 %v775_v62, %v713_v19  ;;  %v1219_v26 = vpop.f32.mrf.mxu1 }
 0x11e   :  { %v1220_v27 = vadd.f32 %v1219_v26, %v2820_v57 }
 0x120   :  { %v1355_v29 = vmax.f32 %v1220_v27, 0.0  ;;  %2280 = vmatmul.msk.bf16.gmra.mxu1 %vm431_vm0, %v2344_v20  ;;  %v579_v30 = vpop.f32.mrf.mxu0  ;;  %vm1679_vm0 = vcmask 7168  }
 0x121   :  { %v580_v31 = vadd.f32 %v2825_v58, %v579_v30 }
 0x122   :  { %v1418_v35 = vadd.f32 %v1417_v15, %v1355_v29  ;;  %v1296_v33 = vpop.f32.mrf.mxu3 }
 0x123   :  { %v714_v36 = vmax.f32 %v580_v31, 0.0  ;;  %v3117_v31 = vpop.f32.mrf.mxu2 }
 0x125   :  { %v777_v38 = vadd.f32 %v776_v23, %v714_v36  ;;  %v1221_v39 = vpop.f32.mrf.mxu1  ;;  %v3112_v23 = vld [vmem:[%s3674_s0 + $0x50] sm:$0xff]  ;;  %v3120_v36 = vadd.f32 %v1296_v33, %v2820_v57 }
 0x126   :  { %v1222_v47 = vadd.f32 %v1221_v39, %v2820_v57  ;;  %1512 = vmatpush.msrb.mxu2 %v3112_v23 }
 0x128   :  { %v1356_v48 = vmax.f32 %v1222_v47, 0.0  ;;  %v582_v49 = vpop.f32.mrf.mxu0 }
 0x129   :  { %v583_v50 = vadd.f32 %v2825_v58, %v582_v49 }
 0x12a   :  { %v1419_v53 = vadd.f32 %v1418_v35, %v1356_v48 }
 0x12b   :  { %v715_v59 = vmax.f32 %v583_v50, 0.0  ;;  %v3124_v60 = vpop.f32.mrf.mxu2 }
 0x12d   :  { %v778_v62 = vadd.f32 %v777_v38, %v715_v59  ;;  %v1224_v0 = vpop.f32.mrf.mxu1 }
 0x12e   :  { %v1225_v3 = vadd.f32 %v1224_v0, %v2820_v57 }
 0x130   :  { %v1357_v4 = vmax.f32 %v1225_v3, 0.0  ;;  %v584_v5 = vpop.f32.mrf.mxu0 }
 0x131   :  { %v585_v7 = vadd.f32 %v2825_v58, %v584_v5 }
 0x132   :  { %v1420_v15 = vadd.f32 %v1419_v53, %v1357_v4  ;;  %v1299_v53 = vpop.f32.mrf.mxu3  ;;  %v3132_v4 = vld [vmem:[%s3674_s0 + $0x48] sm:$0xff] }
 0x133   :  { %v716_v19 = vmax.f32 %v585_v7, 0.0  ;;  %v3127_v3 = vadd.f32 %v1299_v53, %v2820_v57  ;;  %1513 = vmatpush.msrb.mxu2 %v3132_v4 }
 0x135   :  { %v779_v20 = vadd.f32 %v778_v62, %v716_v19  ;;  %v1226_v21 = vpop.f32.mrf.mxu1 }
 0x136   :  { %v1227_v26 = vadd.f32 %v1226_v21, %v2820_v57 }
 0x138   :  { %v1358_v27 = vmax.f32 %v1227_v26, 0.0  ;;  %v587_v29 = vpop.f32.mrf.mxu0 }
 0x139   :  { %v588_v30 = vadd.f32 %v2825_v58, %v587_v29 }
 0x13a   :  { %v1421_v35 = vadd.f32 %v1420_v15, %v1358_v27  ;;  %v1301_v19 = vpop.f32.mrf.mxu3  ;;  %v3140_v27 = vpop.f32.mrf.mxu2 }
 0x13b   :  { %v717_v38 = vmax.f32 %v588_v30, 0.0  ;;  %v3138_v21 = vadd.f32 %v1301_v19, %v2820_v57 }
 0x13d   :  { %v780_v39 = vadd.f32 %v779_v20, %v717_v38  ;;  %v1229_v47 = vpop.f32.mrf.mxu1 }
 0x13e   :  { %v1230_v48 = vadd.f32 %v1229_v47, %v2820_v57 }
 0x140   :  { %v1359_v49 = vmax.f32 %v1230_v48, 0.0  ;;  %v589_v50 = vpop.f32.mrf.mxu0 }
 0x141   :  { %v590_v52 = vadd.f32 %v2825_v58, %v589_v50 }
 0x142   :  { %v1422_v59 = vadd.f32 %v1421_v35, %v1359_v49  ;;  %v1304_v47 = vpop.f32.mrf.mxu3 }
 0x143   :  { %v718_v61 = vmax.f32 %v590_v52, 0.0  ;;  %v3145_v53 = vadd.f32 %v1304_v47, %v2820_v57 }
 0x145   :  { %v781_v62 = vadd.f32 %v780_v39, %v718_v61  ;;  %v1231_v0 = vpop.f32.mrf.mxu1 }
 0x146   :  { %v1232_v5 = vadd.f32 %v1231_v0, %v2820_v57 }
 0x148   :  { %v1360_v7 = vmax.f32 %v1232_v5, 0.0  ;;  %v592_v13 = vpop.f32.mrf.mxu0 }
 0x149   :  { %v593_v15 = vadd.f32 %v2825_v58, %v592_v13 }
 0x14a   :  { %v1423_v20 = vadd.f32 %v1422_v59, %v1360_v7  ;;  %v3150_v59 = vld [vmem:[%s3674_s0 + $0x40] sm:$0xff]  ;;  %v1306_v13 = vpop.f32.mrf.mxu3 }
 0x14b   :  { %v719_v26 = vmax.f32 %v593_v15, 0.0  ;;  %3675 = vst [vmem:[#allocation17_spill] sm:$0xff] %v3150_v59  ;;  %1514 = vmatpush.msrb.mxu2 %v3150_v59  ;;  %v3158_v19 = vadd.f32 %v1306_v13, %v2820_v57 }
 0x14d   :  { %v782_v29 = vadd.f32 %v781_v62, %v719_v26  ;;  %v1234_v30 = vpop.f32.mrf.mxu1  ;;  %v3153_v62 = vpop.f32.mrf.mxu2  ;;  %3676 = vst [vmem:[#allocation18_spill] sm:$0xff] %v3158_v19 }
 0x14e   :  { %v1235_v33 = vadd.f32 %v1234_v30, %v2820_v57 }
 0x150   :  { %v1361_v35 = vmax.f32 %v1235_v33, 0.0  ;;  %v594_v38 = vpop.f32.mrf.mxu0 }
 0x151   :  { %v595_v39 = vadd.f32 %v2825_v58, %v594_v38 }
 0x152   :  { %v1424_v48 = vadd.f32 %v1423_v20, %v1361_v35 }
 0x153   :  { %v720_v49 = vmax.f32 %v595_v39, 0.0 }
 0x155   :  { %v783_v50 = vadd.f32 %v782_v29, %v720_v49  ;;  %v1236_v52 = vpop.f32.mrf.mxu1  ;;  %v3161_v38 = vpop.f32.mrf.mxu2  ;;  %v3167_v49 = vld [vmem:[%s3674_s0 + $0x38] sm:$0xff] }
 0x156   :  { %v1237_v61 = vadd.f32 %v1236_v52, %v2820_v57  ;;  %3677 = vst [vmem:[#allocation19_spill] sm:$0xff] %v3167_v49  ;;  %1515 = vmatpush.msrb.mxu2 %v3167_v49  ;;  %v1309_v52 = vpop.f32.mrf.mxu3 }
 0x158   :  { %v1362_v0 = vmax.f32 %v1237_v61, 0.0  ;;  %v597_v5 = vpop.f32.mrf.mxu0 }
 0x159   :  { %v598_v7 = vadd.f32 %v2825_v58, %v597_v5 }
 0x15a   :  { %v1425_v15 = vadd.f32 %v1424_v48, %v1362_v0  ;;  %v3171_v0 = vadd.f32 %v1309_v52, %v2820_v57 }
 0x15b   :  { %v721_v20 = vmax.f32 %v598_v7, 0.0 }
 0x15c   :  { %3678 = vst [vmem:[#allocation20_spill] sm:$0xff] %v3171_v0 }
 0x15d   :  { %v784_v26 = vadd.f32 %v783_v50, %v721_v20  ;;  %v1239_v29 = vpop.f32.mrf.mxu1 }
 0x15e   :  { %v1240_v30 = vadd.f32 %v1239_v29, %v2820_v57  ;;  %v3175_v29 = vpop.f32.mrf.mxu2 }
 0x160   :  { %v1363_v33 = vmax.f32 %v1240_v30, 0.0  ;;  %v599_v35 = vpop.f32.mrf.mxu0 }
 0x161   :  { %v600_v39 = vadd.f32 %v2825_v58, %v599_v35 }
 0x162   :  { %v1426_v47 = vadd.f32 %v1425_v15, %v1363_v33 }
 0x163   :  { %v722_v48 = vmax.f32 %v600_v39, 0.0 }
 0x165   :  { %v785_v50 = vadd.f32 %v784_v26, %v722_v48  ;;  %v1241_v61 = vpop.f32.mrf.mxu1 }
 0x166   :  { %v1242_v5 = vadd.f32 %v1241_v61, %v2820_v57  ;;  %v3182_v61 = vld [vmem:[%s3674_s0 + $0x30] sm:$0xff] }
 0x167   :  { %3679 = vst [vmem:[#allocation21_spill] sm:$0xff] %v3182_v61  ;;  %1516 = vmatpush.msrb.mxu2 %v3182_v61 }
 0x168   :  { %v1364_v7 = vmax.f32 %v1242_v5, 0.0  ;;  %v602_v13 = vpop.f32.mrf.mxu0 }
 0x169   :  { %v603_v15 = vadd.f32 %v2825_v58, %v602_v13 }
 0x16a   :  { %v1427_v20 = vadd.f32 %v1426_v47, %v1364_v7  ;;  %v3185_v47 = vpop.f32.mrf.mxu2 }
 0x16b   :  { %v723_v30 = vmax.f32 %v603_v15, 0.0  ;;  %3680 = vst [vmem:[#allocation22_spill] sm:$0xff] %v3185_v47 }
 0x16d   :  { %v786_v33 = vadd.f32 %v785_v50, %v723_v30  ;;  %v1244_v35 = vpop.f32.mrf.mxu1 }
 0x16e   :  { %v1245_v39 = vadd.f32 %v1244_v35, %v2820_v57 }
 0x170   :  { %v1365_v49 = vmax.f32 %v1245_v39, 0.0  ;;  %v604_v26 = vpop.f32.mrf.mxu0  ;;  %v3189_v39 = vpop.f32.mrf.mxu3 }
 0x171   :  { %v605_v48 = vadd.f32 %v2825_v58, %v604_v26  ;;  %3681 = vst [vmem:[#allocation23_spill] sm:$0xff] %v3189_v39 }
 0x172   :  { %v1428_v52 = vadd.f32 %v1427_v20, %v1365_v49  ;;  %v3192_v19 = vpop.f32.mrf.mxu2 }
 0x173   :  { %v724_v5 = vmax.f32 %v605_v48, 0.0  ;;  %3682 = vst [vmem:[#allocation24_spill] sm:$0xff] %v3192_v19 }
 0x175   :  { %v787_v7 = vadd.f32 %v786_v33, %v724_v5  ;;  %v1246_v50 = vpop.f32.mrf.mxu1 }
 0x176   :  { %v1247_v13 = vadd.f32 %v1246_v50, %v2820_v57 }
 0x178   :  { %v1366_v15 = vmax.f32 %v1247_v13, 0.0  ;;  %v607_v30 = vpop.f32.mrf.mxu0  ;;  %v3195_v13 = vpop.f32.mrf.mxu3 }
 0x179   :  { %v608_v35 = vadd.f32 %v2825_v58, %v607_v30  ;;  %3683 = vst [vmem:[#allocation25_spill] sm:$0xff] %v3195_v13 }
 0x17a   :  { %v1429_v49 = vadd.f32 %v1428_v52, %v1366_v15  ;;  %v3201_v52 = vld [vmem:[%s3674_s0 + $0x28] sm:$0xff]  ;;  %v3204_v15 = vpop.f32.mrf.mxu2 }
 0x17b   :  { %v725_v20 = vmax.f32 %v608_v35, 0.0  ;;  %3684 = vst [vmem:[#allocation26_spill] sm:$0xff] %v3201_v52  ;;  %1517 = vmatpush.msrb.mxu2 %v3201_v52 }
 0x17c   :  { %3685 = vst [vmem:[#allocation27_spill] sm:$0xff] %v3204_v15 }
 0x17d   :  { %v788_v26 = vadd.f32 %v787_v7, %v725_v20  ;;  %v1249_v0 = vpop.f32.mrf.mxu1 }
 0x17e   :  { %v1250_v48 = vadd.f32 %v1249_v0, %v2820_v57 }
 0x180   :  { %v1367_v61 = vmax.f32 %v1250_v48, 0.0  ;;  %v609_v47 = vpop.f32.mrf.mxu0 }
 0x181   :  { %v610_v33 = vadd.f32 %v2825_v58, %v609_v47 }
 0x182   :  { %v1430_v5 = vadd.f32 %v1429_v49, %v1367_v61  ;;  %v3211_v52 = vpop.f32.mrf.mxu2 }
 0x183   :  { %v726_v50 = vmax.f32 %v610_v33, 0.0 }
 0x185   :  { %v789_v59 = vadd.f32 %v788_v26, %v726_v50  ;;  %v1251_v30 = vpop.f32.mrf.mxu1  ;;  %v3207_v26 = vpop.f32.mrf.mxu3 }
 0x186   :  { %v1252_v39 = vadd.f32 %v1251_v30, %v2820_v57 }
 0x188   :  { %v1368_v0 = vmax.f32 %v1252_v39, 0.0  ;;  %v612_v7 = vpop.f32.mrf.mxu0 }
 0x189   :  { %v613_v61 = vadd.f32 %v2825_v58, %v612_v7 }
 0x18a   :  { %v1431_v47 = vadd.f32 %v1430_v5, %v1368_v0 }
 0x18b   :  { %v727_v35 = vmax.f32 %v613_v61, 0.0 }
 0x18d   :  { %v790_v49 = vadd.f32 %v789_v59, %v727_v35  ;;  %v1254_v20 = vpop.f32.mrf.mxu1  ;;  %v3216_v0 = vpop.f32.mrf.mxu3 }
 0x18e   :  { %v1255_v48 = vadd.f32 %v1254_v20, %v2820_v57  ;;  %3687 = vst [vmem:[#allocation29_spill] sm:$0xff] %v3216_v0  ;;  %v3220_v35 = vpop.f32.mrf.mxu2 }
 0x190   :  { %v1369_v33 = vmax.f32 %v1255_v48, 0.0  ;;  %v614_v50 = vpop.f32.mrf.mxu0 }
 0x191   :  { %v615_v30 = vadd.f32 %v2825_v58, %v614_v50 }
 0x192   :  { %v1432_v13 = vadd.f32 %v1431_v47, %v1369_v33  ;;  %v623_v33 = vadd.f32 %v2825_v58, %v2903_v2 }
 0x193   :  { %v728_v39 = vmax.f32 %v615_v30, 0.0 }
 0x195   :  { %v3213_v19 = vadd.f32 %v790_v49, %v728_v39  ;;  %v1256_v15 = vpop.f32.mrf.mxu1  ;;  %v3226_v50 = vpop.f32.mrf.mxu3 }
 0x196   :  { %v1257_v5 = vadd.f32 %v1256_v15, %v2820_v57  ;;  %3689 = vst [vmem:[#allocation31_spill] sm:$0xff] %v3226_v50  ;;  %v625_v15 = vadd.f32 %v2825_v58, %v2913_v14  ;;  %v3234_v2 = vpop.f32.mrf.mxu2  ;;  %v630_v50 = vadd.f32 %v2825_v58, %v2943_v40  ;;  %v1374_v40 = vmax.f32 %v2916_v17, 0.0 }
 0x197   :  { %3686 = vst [vmem:[#allocation28_spill] sm:$0xff] %v3213_v19 }
 0x198   :  { %v1370_v59 = vmax.f32 %v1257_v5, 0.0  ;;  %v617_v7 = vpop.f32.mrf.mxu0  ;;  %v731_v5 = vmax.f32 %v623_v33, 0.0  ;;  %3690 = vst [vmem:[#allocation32_spill] sm:$0xff] %v3234_v2 }
 0x199   :  { %v618_v48 = vadd.f32 %v2825_v58, %v617_v7 }
 0x19a   :  { %v3218_v61 = vadd.f32 %v1432_v13, %v1370_v59  ;;  %v628_v59 = vadd.f32 %v2825_v58, %v2933_v28  ;;  %v1373_v28 = vmax.f32 %v2906_v8, 0.0  ;;  %v1280_v8 = vadd.f32 %v3007_v25, %v2820_v57 }
 0x19b   :  { %v729_v30 = vmax.f32 %v618_v48, 0.0  ;;  %v648_v25 = vadd.f32 %v2825_v58, %v3076_v32  ;;  %v105_v32 = vld [vmem:[%s3632_s8 + $0x78] sm:$0xff] }
 0x19c   :  { %3688 = vst [vmem:[#allocation30_spill] sm:$0xff] %v3218_v61 }
 0x19d   :  { %v1259_v20 = vpop.f32.mrf.mxu1 }
 0x19e   :  { %v1260_v13 = vadd.f32 %v1259_v20, %v2820_v57  ;;  %v633_v20 = vadd.f32 %v2825_v58, %v2969_v55  ;;  %v1375_v55 = vmax.f32 %v2936_v34, 0.0 }
 0x1a0   :  { %v619_v47 = vpop.f32.mrf.mxu0  ;;  %v1371_v14 = vmax.f32 %v1260_v13, 0.0  ;;  %v735_v13 = vmax.f32 %v633_v20, 0.0  ;;  %v1379_v20 = vmax.f32 %v1280_v8, 0.0 }
 0x1a1   :  { %v620_v49 = vadd.f32 %v2825_v58, %v619_v47  ;;  %v732_v47 = vmax.f32 %v625_v15, 0.0  ;;  %v3243_v15 = vpop.f32.mrf.mxu3 }
 0x1a3   :  { %v730_v39 = vmax.f32 %v620_v49, 0.0  ;;  %v733_v49 = vmax.f32 %v628_v59, 0.0 }
 0x1a5   :  { %v798_v7 = vadd.f32 %v730_v39, %v729_v30  ;;  %v1261_v61 = vpop.f32.mrf.mxu1  ;;  %v734_v39 = vmax.f32 %v630_v50, 0.0 }
 0x1a6   :  { %v1262_v19 = vadd.f32 %v1261_v61, %v2820_v57  ;;  %v635_v61 = vadd.f32 %v2825_v58, %v2979_v6  ;;  %v640_v6 = vadd.f32 %v2825_v58, %v3014_v37  ;;  %v1378_v37 = vmax.f32 %v2987_v11, 0.0 }
 0x1a7   :  { %v799_v0 = vadd.f32 %v798_v7, %v731_v5  ;;  %v643_v7 = vadd.f32 %v2825_v58, %v3040_v56 }
 0x1a8   :  { %v1372_v48 = vmax.f32 %v1262_v19, 0.0  ;;  %v638_v19 = vadd.f32 %v2825_v58, %v3005_v24  ;;  %v736_v50 = vmax.f32 %v635_v61, 0.0  ;;  %v645_v24 = vadd.f32 %v2825_v58, %v3050_v12 }
 0x1a9   :  { %v800_v33 = vadd.f32 %v799_v0, %v732_v47  ;;  %v1376_v47 = vmax.f32 %v2951_v44, 0.0  ;;  %v1380_v44 = vmax.f32 %v3022_v42, 0.0  ;;  %v1381_v12 = vmax.f32 %v3043_v1, 0.0  ;;  %v3270_v11 = vpop.f32.mrf.mxu3 }
 0x1aa   :  { %v1440_v30 = vadd.f32 %v1372_v48, %v1371_v14  ;;  %v3258_v14 = vpop.f32.mrf.mxu2  ;;  %v737_v34 = vmax.f32 %v638_v19, 0.0  ;;  %v1382_v61 = vmax.f32 %v3058_v18, 0.0  ;;  %v153_v19 = vmul.f32 0.001, %v2948_v43 }
 0x1ab   :  { %v801_v2 = vadd.f32 %v800_v33, %v733_v49  ;;  %v1377_v49 = vmax.f32 %v2972_v63, 0.0  ;;  %v738_v33 = vmax.f32 %v640_v6, 0.0  ;;  %v741_v63 = vmax.f32 %v648_v25, 0.0  ;;  %v102_v25 = vld [vmem:[%s3632_s8 + $0x60] sm:$0xff] }
 0x1ac   :  { %v1441_v5 = vadd.f32 %v1440_v30, %v1373_v28  ;;  %v739_v28 = vmax.f32 %v643_v7, 0.0  ;;  %v650_v42 = vadd.f32 %v2825_v58, %v3089_v51  ;;  %v653_v1 = vadd.f32 %v2825_v58, %v3104_v9  ;;  %v103_v7 = vld [vmem:[%s3632_s8 + $0x68] sm:$0xff] }
 0x1ad   :  { %v802_v59 = vadd.f32 %v801_v2, %v734_v39  ;;  %v740_v39 = vmax.f32 %v645_v24, 0.0  ;;  %v655_v18 = vadd.f32 %v2825_v58, %v3117_v31  ;;  %v152_v6 = vmul.f32 0.001, %v2984_v10 }
 0x1ae   :  { %v1442_v0 = vadd.f32 %v1441_v5, %v1374_v40  ;;  %v1383_v43 = vmax.f32 %v3079_v45, 0.0  ;;  %v3286_v51 = vadd.f32 %v2825_v58, %v3124_v60  ;;  %v3290_v9 = vadd.f32 %v2825_v58, %v3140_v27  ;;  %v3300_v58 = vld [vmem:[%s3674_s0 + $0x20] sm:$0xff] }
 0x1af   :  { %v803_v17 = vadd.f32 %v802_v59, %v735_v13  ;;  %v121_v13 = vmul.f32 0.999, %v105_v32  ;;  %v119_v10 = vmul.f32 0.999, %v103_v7  ;;  %v151_v45 = vmul.f32 0.001, %v3019_v41  ;;  %1518 = vmatpush.msrb.mxu2 %v3300_v58 }
 0x1b0   :  { %v1443_v2 = vadd.f32 %v1442_v0, %v1375_v55  ;;  %v104_v55 = vld [vmem:[%s3632_s8 + $0x70] sm:$0xff]  ;;  %v742_v24 = vmax.f32 %v650_v42, 0.0  ;;  %v1384_v60 = vmax.f32 %v3092_v54, 0.0 }
 0x1b1   :  { %v804_v48 = vadd.f32 %v803_v17, %v736_v50  ;;  %v169_v0 = vadd.f32 %v153_v19, %v121_v13  ;;  %v120_v50 = vmul.f32 0.999, %v104_v55  ;;  %v167_v54 = vadd.f32 %v151_v45, %v119_v10  ;;  %v3334_v42 = vpop.f32.mrf.mxu3  ;;  %v3692_v10 = vld [vmem:[#allocation18_spill] sm:$0xff] }
 0x1b2   :  { %v1444_v56 = vadd.f32 %v1443_v2, %v1376_v47  ;;  %v743_v2 = vmax.f32 %v653_v1, 0.0  ;;  %v3302_v27 = vpop.f32.mrf.mxu2  ;;  %v149_v13 = vmul.f32 0.001, %v3084_v46  ;;  %v1390_v45 = vmax.f32 %v3692_v10, 0.0  ;;  %v93_v10 = vld [vmem:[%s3632_s8 + $0x18] sm:$0xff] }
 0x1b3   :  { %v805_v30 = vadd.f32 %v804_v48, %v737_v34  ;;  %195 = vst [vmem:[#allocation10 + $0x78] sm:$0xff] %v169_v0  ;;  %1527 = vmatpush.msrb.mxu3 %v169_v0  ;;  %v168_v47 = vadd.f32 %v152_v6, %v120_v50  ;;  %v1385_v48 = vmax.f32 %v3107_v22, 0.0  ;;  %v746_v22 = vmax.f32 %v3290_v9, 0.0 }
 0x1b4   :  { %v1445_v40 = vadd.f32 %v1444_v56, %v1377_v49  ;;  %v744_v49 = vmax.f32 %v655_v18, 0.0  ;;  %v1387_v56 = vmax.f32 %v3127_v3, 0.0  ;;  %193 = vst [vmem:[#allocation10 + $0x68] sm:$0xff] %v167_v54  ;;  %v1388_v18 = vmax.f32 %v3138_v21, 0.0 }
 0x1b5   :  { %v806_v5 = vadd.f32 %v805_v30, %v738_v33  ;;  %194 = vst [vmem:[#allocation10 + $0x70] sm:$0xff] %v168_v47  ;;  %1528 = vmatpush.msrb.mxu3 %v168_v47  ;;  %v118_v30 = vmul.f32 0.999, %v102_v25  ;;  %v97_v25 = vld [vmem:[%s3632_s8 + $0x38] sm:$0xff] }
 0x1b6   :  { %v1446_v59 = vadd.f32 %v1445_v40, %v1378_v37  ;;  %v1386_v37 = vmax.f32 %v3120_v36, 0.0  ;;  %v3320_v40 = vld [vmem:[%s3673_s5] ss:$0 sm:$0xff]  ;;  %s3707_s5 = sld [smem:[#allocation38_spill]] }
 0x1b7   :  { %v807_v8 = vadd.f32 %v806_v5, %v739_v28  ;;  %1529 = vmatpush.msrb.mxu3 %v167_v54  ;;  %v668_v21 = vadd.f32 %v3320_v40, %v3175_v29  ;;  %v113_v54 = vmul.f32 0.999, %v97_v25 }
 0x1b8   :  { %v1447_v31 = vadd.f32 %v1446_v59, %v1379_v20  ;;  %v745_v20 = vmax.f32 %v3286_v51, 0.0  ;;  %v665_v59 = vadd.f32 %v3320_v40, %v3161_v38  ;;  %v147_v51 = vmul.f32 0.001, %v3132_v4 }
 0x1b9   :  { %v808_v17 = vadd.f32 %v807_v8, %v740_v39  ;;  %v150_v39 = vmul.f32 0.001, %v3055_v16  ;;  %v100_v16 = vld [vmem:[%s3632_s8 + $0x50] sm:$0xff]  ;;  %v99_v8 = vld [vmem:[%s3632_s8 + $0x48] sm:$0xff] }
 0x1ba   :  { %v1448_v34 = vadd.f32 %v1447_v31, %v1380_v44  ;;  %v101_v44 = vld [vmem:[%s3632_s8 + $0x58] sm:$0xff]  ;;  %v115_v6 = vmul.f32 0.999, %v99_v8  ;;  %v98_v31 = vld [vmem:[%s3632_s8 + $0x40] sm:$0xff]  ;;  %v748_v47 = vmax.f32 %v665_v59, 0.0 }
 0x1bb   :  { %v809_v41 = vadd.f32 %v808_v17, %v741_v63  ;;  %v3327_v63 = vld [vmem:[%s3674_s0 + $0x18] sm:$0xff]  ;;  %v117_v5 = vmul.f32 0.999, %v101_v44  ;;  %v166_v1 = vadd.f32 %v150_v39, %v118_v30  ;;  %v3691_v17 = vld [vmem:[#allocation17_spill] sm:$0xff]  ;;  %v749_v44 = vmax.f32 %v668_v21, 0.0 }
 0x1bc   :  { %v1449_v33 = vadd.f32 %v1448_v34, %v1381_v12  ;;  %v663_v12 = vadd.f32 %v3320_v40, %v3153_v62  ;;  %1519 = vmatpush.msrb.mxu2 %v3327_v63  ;;  %v116_v62 = vmul.f32 0.999, %v100_v16  ;;  %v163_v4 = vadd.f32 %v147_v51, %v115_v6  ;;  %v3360_v34 = vpop.f32.mrf.mxu2  ;;  %v96_v39 = vld [vmem:[%s3632_s8 + $0x30] sm:$0xff]  ;;  %v3697_v16 = vld [vmem:[#allocation20_spill] sm:$0xff]  ;;  %v3700_v51 = vld [vmem:[#allocation27_spill] sm:$0xff] }
 0x1bd   :  { %v810_v28 = vadd.f32 %v809_v41, %v742_v24  ;;  %v165_v46 = vadd.f32 %v149_v13, %v117_v5  ;;  %192 = vst [vmem:[#allocation10 + $0x60] sm:$0xff] %v166_v1  ;;  %1530 = vmatpush.msrb.mxu3 %v166_v1  ;;  %v146_v29 = vmul.f32 0.001, %v3691_v17  ;;  %v3693_v24 = vld [vmem:[#allocation22_spill] sm:$0xff]  ;;  %v3696_v5 = vld [vmem:[#allocation21_spill] sm:$0xff]  ;;  %v2552_v21 = vmov 256.0  }
 0x1be   :  { %v1450_v32 = vadd.f32 %v1449_v33, %v1382_v61  ;;  %v148_v61 = vmul.f32 0.001, %v3112_v23  ;;  %v747_v9 = vmax.f32 %v663_v12, 0.0  ;;  %v1389_v23 = vmax.f32 %v3145_v53, 0.0  ;;  %189 = vst [vmem:[#allocation10 + $0x48] sm:$0xff] %v163_v4  ;;  %v3701_v17 = vld [vmem:[#allocation25_spill] sm:$0xff] }
 0x1bf   :  { %v811_v19 = vadd.f32 %v810_v28, %v743_v2  ;;  %191 = vst [vmem:[#allocation10 + $0x58] sm:$0xff] %v165_v46  ;;  %1531 = vmatpush.msrb.mxu3 %v165_v46  ;;  %v114_v53 = vmul.f32 0.999, %v98_v31  ;;  %v3695_v28 = vld [vmem:[#allocation23_spill] sm:$0xff]  ;;  %v144_v13 = vmul.f32 0.001, %v3696_v5  ;;  %2377 = vrcp.f32 %v2552_v21 }
 0x1c0   :  { %v1451_v55 = vadd.f32 %v1450_v32, %v1383_v43  ;;  %v164_v50 = vadd.f32 %v148_v61, %v116_v62  ;;  %v3350_v43 = vld [vmem:[%s3674_s0 + $0x10] sm:$0xff]  ;;  %v3368_v30 = vadd.f32 %v3695_v28, %v2820_v57  ;;  %v112_v32 = vmul.f32 0.999, %v96_v39  ;;  %v3698_v62 = vld [vmem:[#allocation24_spill] sm:$0xff] }
 0x1c1   :  { %v812_v0 = vadd.f32 %v811_v19, %v744_v49  ;;  %1520 = vmatpush.msrb.mxu2 %v3350_v43  ;;  %v162_v41 = vadd.f32 %v146_v29, %v114_v53  ;;  %v1391_v19 = vmax.f32 %v3697_v16, 0.0  ;;  %v673_v61 = vadd.f32 %v3320_v40, %v3698_v62  ;;  %v3702_v39 = vld [vmem:[#allocation32_spill] sm:$0xff] }
 0x1c2   :  { %v1452_v38 = vadd.f32 %v1451_v55, %v1384_v60  ;;  %190 = vst [vmem:[#allocation10 + $0x50] sm:$0xff] %v164_v50  ;;  %v670_v60 = vadd.f32 %v3320_v40, %v3693_v24  ;;  %1532 = vmatpush.msrb.mxu3 %v164_v50  ;;  %v3384_v55 = vpop.f32.mrf.mxu3  ;;  %v160_v46 = vadd.f32 %v144_v13, %v112_v32  ;;  %v1392_v6 = vmax.f32 %v3368_v30, 0.0  ;;  %v3703_v13 = vld [vmem:[#allocation29_spill] sm:$0xff] }
 0x1c3   :  { %v813_v7 = vadd.f32 %v812_v0, %v745_v20  ;;  %v3694_v20 = vld [vmem:[#allocation19_spill] sm:$0xff]  ;;  %188 = vst [vmem:[#allocation10 + $0x40] sm:$0xff] %v162_v41  ;;  %v3699_v0 = vld [vmem:[#allocation26_spill] sm:$0xff]  ;;  %v751_v53 = vmax.f32 %v673_v61, 0.0  ;;  %v1315_v29 = vadd.f32 %v3701_v17, %v2820_v57  ;;  %v141_v25 = vmul.f32 0.001, %v3327_v63 }
 0x1c4   :  { %v1453_v2 = vadd.f32 %v1452_v38, %v1385_v48  ;;  %v145_v33 = vmul.f32 0.001, %v3694_v20  ;;  %1533 = vmatpush.msrb.mxu3 %v163_v4  ;;  %v750_v1 = vmax.f32 %v670_v60, 0.0  ;;  %v143_v50 = vmul.f32 0.001, %v3699_v0  ;;  %186 = vst [vmem:[#allocation10 + $0x30] sm:$0xff] %v160_v46 }
 0x1c5   :  { %v814_v49 = vadd.f32 %v813_v7, %v746_v22  ;;  %v142_v4 = vmul.f32 0.001, %v3300_v58  ;;  %v140_v63 = vmul.f32 0.001, %v3350_v43  ;;  %v3410_v28 = vpop.eup %2377  ;;  %v1393_v30 = vmax.f32 %v1315_v29, 0.0  ;;  %v1491_v61 = vld [vmem:[%s3674_s0] sm:$0xff] }
 0x1c6   :  { %v1454_v48 = vadd.f32 %v1453_v2, %v1386_v37  ;;  %v161_v22 = vadd.f32 %v145_v33, %v113_v54  ;;  %v95_v37 = vld [vmem:[%s3632_s8 + $0x28] sm:$0xff]  ;;  %1534 = vmatpush.msrb.mxu3 %v162_v41  ;;  %v109_v2 = vmul.f32 0.999, %v93_v10  ;;  %v680_v41 = vadd.f32 %v3320_v40, %v3220_v35  ;;  %v92_v54 = vld [vmem:[%s3632_s8 + $0x10] sm:$0xff] }
 0x1c7   :  { %v815_v12 = vadd.f32 %v814_v49, %v747_v9  ;;  %v111_v8 = vmul.f32 0.999, %v95_v37  ;;  %v675_v9 = vadd.f32 %v3320_v40, %v3700_v51  ;;  %v1317_v49 = vadd.f32 %v3207_v26, %v2820_v57 }
 0x1c8   :  { %v1455_v36 = vadd.f32 %v1454_v48, %v1387_v56  ;;  %187 = vst [vmem:[#allocation10 + $0x38] sm:$0xff] %v161_v22  ;;  %v94_v56 = vld [vmem:[%s3632_s8 + $0x20] sm:$0xff]  ;;  %1535 = vmatpush.msrb.mxu3 %v161_v22  ;;  %v157_v33 = vadd.f32 %v141_v25, %v109_v2  ;;  %v683_v35 = vadd.f32 %v3320_v40, %v3702_v39  ;;  %v138_v0 = vmul.f32 0.001, %v1491_v61 }
 0x1c9   :  { %v816_v59 = vadd.f32 %v815_v12, %v748_v47  ;;  %v159_v31 = vadd.f32 %v143_v50, %v111_v8  ;;  %v110_v7 = vmul.f32 0.999, %v94_v56  ;;  %v752_v58 = vmax.f32 %v675_v9, 0.0  ;;  %v91_v12 = vld [vmem:[%s3632_s8 + $0x8] sm:$0xff] }
 0x1ca   :  { %v1456_v3 = vadd.f32 %v1455_v36, %v1388_v18  ;;  %v678_v18 = vadd.f32 %v3320_v40, %v3211_v52  ;;  %1536 = vmatpush.msrb.mxu3 %v160_v46  ;;  %183 = vst [vmem:[#allocation10 + $0x18] sm:$0xff] %v157_v33  ;;  %v107_v32 = vmul.f32 0.999, %v91_v12  ;;  %v1320_v16 = vadd.f32 %v3703_v13, %v2820_v57  ;;  %v90_v36 = vld [vmem:[%s3632_s8] sm:$0xff] }
 0x1cb   :  { %v817_v38 = vadd.f32 %v816_v59, %v749_v44  ;;  %185 = vst [vmem:[#allocation10 + $0x28] sm:$0xff] %v159_v31  ;;  %v158_v60 = vadd.f32 %v142_v4, %v110_v7  ;;  %v108_v44 = vmul.f32 0.999, %v92_v54  ;;  %v685_v62 = vadd.f32 %v3320_v40, %v3258_v14  ;;  %v1334_v59 = vpop.f32.mrf.mxu3  ;;  %v3705_v4 = vld [vmem:[#allocation28_spill] sm:$0xff] }
 0x1cc   :  { %v1457_v47 = vadd.f32 %v1456_v3, %v1389_v23  ;;  %v692_v23 = vpop.f32.mrf.mxu2  ;;  %1537 = vmatpush.msrb.mxu3 %v159_v31  ;;  %v753_v26 = vmax.f32 %v678_v18, 0.0  ;;  %v106_v8 = vmul.f32 0.999, %v90_v36  ;;  %v1394_v50 = vmax.f32 %v1317_v49, 0.0 }
 0x1cd   :  { %v818_v24 = vadd.f32 %v817_v38, %v750_v1  ;;  %184 = vst [vmem:[#allocation10 + $0x20] sm:$0xff] %v158_v60  ;;  %v156_v43 = vadd.f32 %v140_v63, %v108_v44  ;;  %v755_v3 = vmax.f32 %v683_v35, 0.0  ;;  %v688_v56 = vadd.f32 %v3320_v40, %v3302_v27 }
 0x1ce   :  { %v1458_v52 = vadd.f32 %v1457_v47, %v1390_v45  ;;  %v1492_v45 = vld [vmem:[%s3674_s0 + $0x8] sm:$0xff]  ;;  %1538 = vmatpush.msrb.mxu3 %v158_v60  ;;  %v154_v21 = vadd.f32 %v138_v0, %v106_v8  ;;  %v1395_v38 = vmax.f32 %v1320_v16, 0.0  ;;  %v1325_v7 = vadd.f32 %v3243_v15, %v2820_v57  ;;  %s1836_s0 = sshll.u32 %s3644_s20, 4  ;;  %s1837_s0 = int_to_ptr.hbm [resolvable:$true] %s1836_s0 }
 0x1cf   :  { %v819_v20 = vadd.f32 %v818_v24, %v751_v53  ;;  %1521 = vmatpush.msrb.mxu2 %v1492_v45  ;;  %v139_v5 = vmul.f32 0.001, %v1492_v45  ;;  %182 = vst [vmem:[#allocation10 + $0x10] sm:$0xff] %v156_v43  ;;  %v792_v53 = vrot.slane %v3705_v4, 4  ;;  %v756_v29 = vmax.f32 %v685_v62, 0.0 }
 0x1d0   :  { %v1459_v48 = vadd.f32 %v1458_v52, %v1391_v19  ;;  %v754_v19 = vmax.f32 %v680_v41, 0.0  ;;  %1539 = vmatpush.msrb.mxu3 %v157_v33  ;;  %v690_v18 = vadd.f32 %v3320_v40, %v3360_v34  ;;  %180 = vst [vmem:[#allocation10] sm:$0xff] %v154_v21  ;;  %v1327_v27 = vadd.f32 %v3270_v11, %v2820_v57  ;;  %v3706_v11 = vld [vmem:[#allocation30_spill] sm:$0xff] }
 0x1d1   :  { %v820_v22 = vadd.f32 %v819_v20, %v752_v58  ;;  %1522 = vmatpush.msrb.mxu2 %v1491_v61  ;;  %v155_v46 = vadd.f32 %v139_v5, %v107_v32  ;;  %v757_v2 = vmax.f32 %v688_v56, 0.0  ;;  %v693_v25 = vadd.f32 %v3320_v40, %v692_v23 }
 0x1d2   :  { %v1460_v1 = vadd.f32 %v1459_v48, %v1392_v6  ;;  %v3704_v6 = vld [vmem:[#allocation31_spill] sm:$0xff]  ;;  %1540 = vmatpush.msrb.mxu3 %v156_v43  ;;  %v1397_v58 = vmax.f32 %v1325_v7, 0.0  ;;  %v1330_v49 = vadd.f32 %v3334_v42, %v2820_v57  ;;  %v836_v34 = vmul.f32 256.0, %v3410_v28 }
 0x1d3   :  { %v821_v37 = vadd.f32 %v820_v22, %v753_v26  ;;  %v1322_v14 = vadd.f32 %v3704_v6, %v2820_v57  ;;  %181 = vst [vmem:[#allocation10 + $0x8] sm:$0xff] %v155_v46  ;;  %v793_v41 = vadd.f32 %v792_v53, %v3705_v4  ;;  %v758_v54 = vmax.f32 %v690_v18, 0.0  ;;  %v1336_v48 = vpop.f32.mrf.mxu3 }
 0x1d4   :  { %v1461_v51 = vadd.f32 %v1460_v1, %v1393_v30  ;;  %1541 = vmatpush.msrb.mxu3 %v155_v46  ;;  %v694_v24 = vpop.f32.mrf.mxu2  ;;  %v1434_v33 = vrot.slane %v3706_v11, 4  ;;  %v1398_v63 = vmax.f32 %v1327_v27, 0.0  ;;  %v1332_v23 = vadd.f32 %v3384_v55, %v2820_v57 }
 0x1d5   :  { %v822_v9 = vadd.f32 %v821_v37, %v754_v19  ;;  %v1396_v47 = vmax.f32 %v1322_v14, 0.0  ;;  %v695_v20 = vadd.f32 %v3320_v40, %v694_v24  ;;  %v759_v26 = vmax.f32 %v693_v25, 0.0  ;;  %v172_v25 = vld [vmem:[%s3707_s5] sm:$0x1] }
 0x1d6   :  { %v1462_v31 = vadd.f32 %v1461_v51, %v1394_v50  ;;  %1542 = vmatpush.msrb.mxu3 %v154_v21  ;;  %v1399_v42 = vmax.f32 %v1330_v49, 0.0  ;;  %v1335_v35 = vadd.f32 %v1334_v59, %v2820_v57  ;;  %v794_v45 = vrot.slane %v793_v41, 2 }
 0x1d7   :  { %v823_v17 = vadd.f32 %v822_v9, %v755_v3  ;;  %v760_v22 = vmax.f32 %v695_v20, 0.0  ;;  %v837_v43 = vsub.f32 1.0, %v836_v34  ;;  %v1435_v40 = vadd.f32 %v1434_v33, %v3706_v11 }
 0x1d8   :  { %v1463_v10 = vadd.f32 %v1462_v31, %v1395_v38  ;;  %v1400_v5 = vmax.f32 %v1332_v23, 0.0  ;;  %v1337_v13 = vadd.f32 %v1336_v48, %v2820_v57  ;;  %v1401_v55 = vmax.f32 %v1335_v35, 0.0 }
 0x1d9   :  { %v824_v60 = vadd.f32 %v823_v17, %v756_v29  ;;  %v795_v1 = vadd.f32 %v794_v45, %v793_v41  ;;  %v1436_v61 = vrot.slane %v1435_v40, 2  ;;  %v838_v59 = vmul.f32 %v3410_v28, %v837_v43 }
 0x1da   :  { %v1464_v15 = vadd.f32 %v1463_v10, %v1396_v47  ;;  %v1402_v37 = vmax.f32 %v1337_v13, 0.0  ;;  %vm840_vm1 = vweird.f32 %v3410_v28  ;;  %v1556_v34 = vlaneseq }
 0x1db   :  { %v825_v52 = vadd.f32 %v824_v60, %v757_v2  ;;  %v796_v0 = vrot.slane %v795_v1, 1  ;;  %v1437_v6 = vadd.f32 %v1436_v61, %v1435_v40  ;;  %v839_v51 = vadd.f32 %v3410_v28, %v838_v59 }
 0x1dc   :  { %v1465_v44 = vadd.f32 %v1464_v15, %v1397_v58  ;;  %v173_v58 = vmul.f32 0.001, %v172_v25  ;;  %v1557_v41 = vand.u32 127, %v1556_v34 }
 0x1dd   :  { %v826_v30 = vadd.f32 %v825_v52, %v758_v54  ;;  %v797_v3 = vadd.f32 %v796_v0, %v795_v1  ;;  %v1438_v21 = vrot.slane %v1437_v6, 1  ;;  %v841_v31 = vsel %vm840_vm1, %v3410_v28, %v839_v51  ;;  %v170_v28 = vld [vmem:[%s3633_s9] sm:$0x1]  ;;  %s2553_s9 = smov 120  }
 0x1de   :  { %v1466_v39 = vadd.f32 %v1465_v44, %v1398_v63  ;;  %v171_v15 = vmul.f32 0.999, %v170_v28  ;;  %v2376_v52 = vld [vmem:[%s3707_s5] ss:$0 sm:$0xff]  ;;  %vm1558_vm5 = vcmp.lt.s32.totalorder %v1557_v41, 8  ;;  %vm1681_vm1 = vcmask 15360  }
 0x1df   :  { %v827_v12 = vadd.f32 %v826_v30, %v759_v26  ;;  %v842_v53 = vmul.f32 %v841_v31, %v797_v3  ;;  %v1439_v29 = vadd.f32 %v1438_v21, %v1437_v6  ;;  %s1860_s5 = sshll.u32 %s3646_s22, 4  ;;  %s1861_s5 = int_to_ptr.hbm [resolvable:$true] %s1860_s5 }
 0x1e0   :  { %v1467_v32 = vadd.f32 %v1466_v39, %v1399_v42  ;;  %v174_v49 = vadd.f32 %v173_v58, %v171_v15  ;;  %v1630_v42 = vld [vmem:[%s3634_s10] sm:$0x3] }
 0x1e1   :  { %v828_v16 = vadd.f32 %v827_v12, %v760_v22  ;;  %v1477_v27 = vmul.f32 %v1439_v29, %v841_v31  ;;  %1632 = vrot.lane.b32.xlu2 %v1630_v42, %s2554_s30 }
 0x1e2   :  { %v1468_v19 = vadd.f32 %v1467_v32, %v1400_v5  ;;  %196 = vst [vmem:[#allocation11] sm:$0x1] %v174_v49  ;;  %v1553_v54 = vperm.slane %v174_v49, 0 }
 0x1e3   :  { %v829_v62 = vrot.slane %v828_v16, 4 }
 0x1e4   :  { %v1469_v36 = vadd.f32 %v1468_v19, %v1401_v55 }
 0x1e5   :  { %v830_v46 = vadd.f32 %v829_v62, %v828_v16 }
 0x1e6   :  { %v1470_v8 = vadd.f32 %v1469_v36, %v1402_v37 }
 0x1e7   :  { %v831_v50 = vrot.slane %v830_v46, 2 }
 0x1e8   :  { %v1471_v14 = vrot.slane %v1470_v8, 4 }
 0x1e9   :  { %v832_v9 = vadd.f32 %v831_v50, %v830_v46 }
 0x1ea   :  { %v1472_v57 = vadd.f32 %v1471_v14, %v1470_v8 }
 0x1eb   :  { %v833_v56 = vrot.slane %v832_v9, 1 }
 0x1ec   :  { %v1473_v38 = vrot.slane %v1472_v57, 2 }
 0x1ed   :  { %v834_v7 = vadd.f32 %v833_v56, %v832_v9 }
 0x1ee   :  { %v1474_v4 = vadd.f32 %v1473_v38, %v1472_v57 }
 0x1ef   :  { %v843_v17 = vmul.f32 %v841_v31, %v834_v7  ;;  %v3493_v7 = vld [vmem:[%s3635_s11] sm:$0xf] }
 0x1f0   :  { %v1475_v18 = vrot.slane %v1474_v4, 1  ;;  %v1674_v28 = vperm.slane %v3493_v7, 3 }
 0x1f1   :  { %v1482_v47 = vsel %vm1481_vm2, %v843_v17, %v842_v53  ;;  %v1664_v53 = vperm.slane %v3493_v7, 1  ;;  %v1659_v17 = vperm.slane %v3493_v7, 0  ;;  %vm1683_vm2 = vcmask 23552  }
 0x1f2   :  { %v1476_v10 = vadd.f32 %v1475_v18, %v1474_v4  ;;  %v1669_v4 = vperm.slane %v3493_v7, 2 }
 0x1f4   :  { %v1478_v24 = vmul.f32 %v1476_v10, %v841_v31 }
 0x1f6   :  { %v1487_v60 = vsel %vm1486_vm3, %v1478_v24, %v1477_v27 }
 0x1f7   :  { %v1490_v2 = vsel %vm1489_vm4, %v1482_v47, %v1487_v60 }
 0x1f8   :  { %1523 = vmatmul.f32.vlgmr.msrb.gmra.mxu2 %v1490_v2  ;;  %1543 = vmatmul.f32.vlgmr.msrb.gmra.mxu3 %v1490_v2 }
 0x23b   :  { %v1633_v46 = vpop.permute.xlu2 %1632 }
 0x27b   :  { %v1524_v20 = vpop.f32.mrf.mxu2  ;;  %v1544_v11 = vpop.f32.mrf.mxu3 }
 0x27c   :  { %v3468_v33 = vadd.f32 %v2376_v52, %v1524_v20  ;;  %v1555_v44 = vadd.f32 %v1553_v54, %v1544_v11 }
 0x27e   :  { %v3471_v63 = vsel %vm1558_vm5, %v1555_v44, 0.0  ;;  %v1601_v23 = vsel %vm1600_vm6, %v3468_v33, -inf  ;;  %v1559_v12 = vsel %vm1558_vm5, %v3468_v33, 0.0 }
 0x27f   :  { %1602 = vmax.xlane.f32.xlu0 %v1601_v23  ;;  %v1560_v22 = vmul.f32 %v1559_v12, %v1559_v12  ;;  %v1580_v15 = vmul.f32 %v3471_v63, %v3471_v63 }
 0x281   :  { %v1561_v43 = vsel %vm1489_vm4, %v1560_v22, 0.0  ;;  %v1582_v49 = vsel %vm1581_vm14, %v1580_v15, 0.0 }
 0x2f2   :  { %v1603_v30 = vpop.xlane.xlu0 %1602 }
 0x2f3   :  { %v1604_v26 = vsub.f32 %v3468_v33, %v1603_v30 }
 0x2f5   :  { %v1605_v48 = vmul.f32 1.442695, %v1604_v26 }
 0x2f7   :  { %2379 = vpow2.f32 %v1605_v48 }
 0x2fd   :  { %v2380_v39 = vpop.eup %2379 }
 0x2fe   :  { %1608 = vrot.lane.b32.xlu0 %v2380_v39, %s2553_s9 }
 0x370   :  { %v1609_v35 = vpop.permute.xlu0 %1608 }
 0x371   :  { %v1612_v45 = vsel %vm1611_vm7, %v1609_v35, 0.0 }
 0x372   :  { %1613 = vadd.xlane.f32.xlu1 %v1612_v45 }
 0x37a   :  { %1562 = vadd.xlane.f32.xlu1 %v1561_v43 }
 0x393   :  { %1640 = vrot.lane.b32.xlu1 %v1557_v41, %s2554_s30 }
 0x3e5   :  { %v1614_v40 = vpop.xlane.xlu1 %1613 }
 0x3e6   :  { %2381 = vrcp.f32 %v1614_v40  ;;  %v1626_v19 = vand.u32 2147483648, %v1614_v40  ;;  %v1624_v1 = vand.u32 2147483647, %v1614_v40  ;;  %vm1620_vm9 = vweird.f32 %v1614_v40 }
 0x3e8   :  { %v1627_v36 = vor.u32 1.1754944e-38, %v1626_v19  ;;  %vm1625_vm11 = vcmp.eq.f32.partialorder %v1624_v1, 8.507059e+37 }
 0x3ec   :  { %v2382_v32 = vpop.eup %2381 }
 0x3ed   :  { %v1616_v5 = vmul.f32 %v2382_v32, %v1614_v40  ;;  %v1563_v13 = vpop.xlane.xlu1 %1562  ;;  %vm1621_vm8 = vweird.f32 %v2382_v32 }
 0x3ee   :  { %2383 = vrsqrt.f32 %v1563_v13  ;;  %vm1622_vm10 = vmor %vm1620_vm9, %vm1621_vm8  ;;  %vm1571_vm12 = vcmp.eq.f32.partialorder %v1563_v13, inf  ;;  %v1574_v56 = vand.u32 2147483648, %v1563_v13  ;;  %vm1573_vm13 = vcmp.eq.f32.partialorder %v1563_v13, 0.0 }
 0x3ef   :  { %v1617_v16 = vsub.f32 1.0, %v1616_v5 }
 0x3f1   :  { %v1618_v55 = vmul.f32 %v2382_v32, %v1617_v16 }
 0x3f3   :  { %v1619_v62 = vadd.f32 %v2382_v32, %v1618_v55 }
 0x3f4   :  { %v2384_v61 = vpop.eup %2383 }
 0x3f5   :  { %v1565_v37 = vmul.f32 %v2384_v61, %v1563_v13  ;;  %v1623_v59 = vsel %vm1622_vm10, %v2382_v32, %v1619_v62  ;;  %v3520_v62 = vshrl.u32 %v1556_v34, 7  ;;  %v1746_v34 = vld [vmem:[%s3636_s12] sm:$0xff]  ;;  %s1858_s12 = sshll.u32 %s2560_s21, 4  ;;  %s1859_s12 = int_to_ptr.vmem [resolvable:$true] %s1858_s12 }
 0x3f6   :  { %v1628_v8 = vsel %vm1625_vm11, %v1627_v36, %v1623_v59  ;;  %vm1725_vm11 = vcmask 1043456   ;;  %1866 = dma.vmem_to_hbm [thread:$0]  %s1859_s12, 2048, %s1861_s5, [#allocation9], %s2559_s27, %s2559_s27, %s2554_s30  }
 0x3f7   :  { %v1566_v0 = vmul.f32 %v2384_v61, %v1565_v37  ;;  %v1629_v50 = vmul.f32 %v2380_v39, %v1628_v8  ;;  %v3525_v37 = vstv %s1751_s1  ;;  %s1834_s1 = sshll.u32 %s2558_s17, 4  ;;  %s1835_s1 = int_to_ptr.vmem [resolvable:$true] %s1834_s1 }
 0x3f8   :  { %vm1753_vm8 = vcmp.eq.s32.totalorder %v3520_v62, %v3525_v37 }
 0x3f9   :  { %v1567_v6 = vmul.f32 0.5, %v1566_v0  ;;  %v3486_v14 = vmul.f32 %v1633_v46, %v1629_v50 }
 0x3fb   :  { %v1568_v51 = vsub.f32 1.5, %v1567_v6  ;;  %v1636_v9 = vsel %vm1600_vm6, %v3486_v14, -inf }
 0x3fc   :  { %1637 = vmax.xlane.f32.xlu2 %v1636_v9 }
 0x3fd   :  { %v1569_v57 = vmul.f32 %v2384_v61, %v1568_v51  ;;  %v1747_v61 = vstv %s3708_s2  ;;  %s2557_s2 = smov 124  }
 0x3ff   :  { %v1570_v3 = vmul.f32 %v1569_v57, %v1563_v13 }
 0x401   :  { %v1572_v21 = vsel %vm1571_vm12, %v1563_v13, %v1570_v3  ;;  %v1757_v3 = vld [vmem:[%s3637_s13] sm:$0xff] }
 0x402   :  { %v1575_v38 = vsel %vm1573_vm13, %v1574_v56, %v1572_v21 }
 0x403   :  { %v1576_v31 = vmax.f32 %v1575_v38, 1e-12 }
 0x405   :  { %2385 = vrcp.f32 %v1576_v31  ;;  %v1641_v52 = vpop.permute.xlu1 %1640 }
 0x40b   :  { %v2386_v29 = vpop.eup %2385 }
 0x40c   :  { %v3498_v18 = vmul.f32 %v2386_v29, %v1559_v12 }
 0x40e   :  { %v1670_v47 = vmul.f32 %v1669_v4, %v3498_v18  ;;  %v1665_v10 = vmul.f32 %v1664_v53, %v3498_v18  ;;  %v1660_v27 = vmul.f32 %v1659_v17, %v3498_v18  ;;  %v1675_v25 = vmul.f32 %v1674_v28, %v3498_v18 }
 0x40f   :  { %v1712_v17 = vmul.f32 0.01, %v3498_v18 }
 0x410   :  { %v1671_v24 = vsel %vm1489_vm4, %v1670_v47, 0.0  ;;  %v1666_v60 = vsel %vm1489_vm4, %v1665_v10, 0.0  ;;  %v1661_v2 = vsel %vm1489_vm4, %v1660_v27, 0.0  ;;  %v1676_v58 = vsel %vm1489_vm4, %v1675_v25, 0.0 }
 0x411   :  { %1672 = vadd.xlane.f32.xlu2 %v1671_v24  ;;  %1667 = vadd.xlane.f32.xlu1 %v1666_v60  ;;  %v1711_v27 = vmul.f32 0.99, %v3493_v7  ;;  %v1713_v24 = vperm.slane %v1712_v17, 0 }
 0x412   :  { %1662 = vadd.xlane.f32.xlu0 %v1661_v2 }
 0x413   :  { %v1714_v28 = vadd.f32 %v1713_v24, %v1711_v27 }
 0x419   :  { %1677 = vadd.xlane.f32.xlu2 %v1676_v58  ;;  %1583 = vadd.xlane.f32.xlu1 %v1582_v49  ;;  %v1719_v49 = vperm.slane %v1712_v17, 1 }
 0x432   :  { %1780 = vrot.lane.b32.xlu1 %v3468_v33, %s2553_s9 }
 0x46f   :  { %v1638_v41 = vpop.xlane.xlu2 %1637 }
 0x470   :  { %vm1639_vm15 = vcmp.eq.f32.partialorder %v3486_v14, %v1638_v41 }
 0x471   :  { %v1642_v54 = vsel %vm1639_vm15, %v1641_v52, 4 }
 0x472   :  { %v1643_v20 = vsel %vm1600_vm6, %v1642_v54, 2147483647  ;;  %vm3531_vm6 = vcmp.eq.s32.totalorder %v3520_v62, %v1747_v61 }
 0x473   :  { %v1645_v11 = vshra.s32 %v1643_v20, 16  ;;  %v1644_v6 = vand.u32 65535, %v1643_v20 }
 0x475   :  { %v1647_v44 = vcvt.s32.f32 %v1645_v11  ;;  %v1646_v9 = vcvt.s32.f32 %v1644_v6 }
 0x477   :  { %1648 = vmin.xlane.f32.xlu2 %v1647_v44 }
 0x484   :  { %v1673_v23 = vpop.xlane.xlu2 %1672  ;;  %v1668_v30 = vpop.xlane.xlu1 %1667 }
 0x485   :  { %v1663_v26 = vpop.xlane.xlu0 %1662 }
 0x486   :  { %v1680_v48 = vsel %vm1679_vm0, %v1663_v26, %v1668_v30  ;;  %vm1770_vm0 = vcmask 31744  }
 0x487   :  { %v1682_v33 = vsel %vm1681_vm1, %v1680_v48, %v1673_v23  ;;  %vm1792_vm1 = vcmask 64512  }
 0x48c   :  { %v1678_v39 = vpop.xlane.xlu2 %1677  ;;  %v1584_v42 = vpop.xlane.xlu1 %1583 }
 0x48d   :  { %2387 = vrsqrt.f32 %v1584_v42  ;;  %v1684_v35 = vsel %vm1683_vm2, %v1682_v33, %v1678_v39  ;;  %vm1592_vm3 = vcmp.eq.f32.partialorder %v1584_v42, inf  ;;  %v1595_v16 = vand.u32 2147483648, %v1584_v42 }
 0x48e   :  { %v1685_v45 = vsel %vm1611_vm7, %v1684_v35, -inf  ;;  %vm1594_vm5 = vcmp.eq.f32.partialorder %v1584_v42, 0.0  ;;  %vm1794_vm2 = vcmask 97280  }
 0x48f   :  { %1686 = vmax.xlane.f32.xlu0 %v1685_v45 }
 0x493   :  { %v2388_v12 = vpop.eup %2387 }
 0x494   :  { %v1586_v22 = vmul.f32 %v2388_v12, %v1584_v42 }
 0x496   :  { %v1587_v43 = vmul.f32 %v2388_v12, %v1586_v22  ;;  %v1758_v22 = vperm.slane %v3486_v14, 0 }
 0x498   :  { %v1588_v40 = vmul.f32 0.5, %v1587_v43 }
 0x49a   :  { %v1589_v32 = vsub.f32 1.5, %v1588_v40  ;;  %v1764_v40 = vperm.slane %v3486_v14, 1 }
 0x49c   :  { %v1590_v5 = vmul.f32 %v2388_v12, %v1589_v32 }
 0x49e   :  { %v1591_v13 = vmul.f32 %v1590_v5, %v1584_v42  ;;  %v1773_v5 = vld [vmem:[%s3634_s10] sm:$0x3] }
 0x4a0   :  { %v1593_v19 = vsel %vm1592_vm3, %v1584_v42, %v1591_v13  ;;  %v1774_v13 = vperm.slane %v1773_v5, 0 }
 0x4a1   :  { %v1596_v55 = vsel %vm1594_vm5, %v1595_v16, %v1593_v19  ;;  %v1772_v16 = vld [vmem:[%s3638_s14] sm:$0xff]  ;;  %v1776_v19 = vperm.slane %v1773_v5, 1 }
 0x4a2   :  { %v1597_v1 = vmax.f32 %v1596_v55, 1e-12  ;;  %v1775_v55 = vsel %vm3531_vm6, %v1774_v13, %v1772_v16 }
 0x4a4   :  { %2389 = vrcp.f32 %v1597_v1  ;;  %v1781_v6 = vpop.permute.xlu1 %1780 }
 0x4aa   :  { %v2390_v36 = vpop.eup %2389 }
 0x4ab   :  { %v3528_v59 = vmul.f32 %v2390_v36, %v3471_v63 }
 0x4ad   :  { %v1749_v8 = vperm.slane %v3528_v59, 2  ;;  %v1754_v0 = vperm.slane %v3528_v59, 3 }
 0x4af   :  { %v1750_v63 = vsel %vm3531_vm6, %v1749_v8, %v1746_v34 }
 0x4b0   :  { %v1755_v50 = vsel %vm1753_vm8, %v1754_v0, %v1750_v63 }
 0x4b1   :  { %1756 = vst [vmem:[#allocation5] sm:$0xff] %v1755_v50 }
 0x4b2   :  { %1825 = dma.vmem_to_hbm [thread:$0]  %s1821_s3, 128, %s1823_s28, [#allocation6]  }
 0x4b3   :  { %1842 = dma.vmem_to_hbm [thread:$0]  %s1835_s1, 512, %s1837_s0, [#allocation6], %s2559_s27, %s2559_s27, %s2554_s30  }
 0x4b4   :  { %s2561_s3 = smov [#allocation11]  }
 0x4b5   :  { %s1872_s4 = sshll.u32 %s2561_s3, 4  ;;  %s1873_s4 = int_to_ptr.vmem [resolvable:$true] %s1872_s4 }
 0x4b6   :  { %1877 = dma.vmem_to_hbm [thread:$0]  %s1873_s4, 16, %s1875_s29, [#allocation12]  }
 0x4ea   :  { %v1649_v51 = vpop.xlane.xlu2 %1648 }
 0x4eb   :  { %vm1650_vm9 = vcmp.eq.f32.partialorder %v1647_v44, %v1649_v51  ;;  %v1655_v53 = vcvt.f32.s32 %v1649_v51 }
 0x4ec   :  { %v1651_v57 = vsel %vm1650_vm9, %v1646_v9, inf }
 0x4ed   :  { %1652 = vmin.xlane.f32.xlu2 %v1651_v57  ;;  %v1656_v47 = vshll.u32 %v1655_v53, 16 }
 0x502   :  { %v1687_v56 = vpop.xlane.xlu0 %1686 }
 0x503   :  { %v1688_v21 = vsub.f32 %v1684_v35, %v1687_v56 }
 0x505   :  { %1760 = vrot.lane.b32.xlu2 %v1757_v3, %s2554_s30  ;;  %v1689_v38 = vmul.f32 1.442695, %v1688_v21 }
 0x507   :  { %2391 = vpow2.f32 %v1689_v38 }
 0x50d   :  { %v3551_v31 = vpop.eup %2391 }
 0x50e   :  { %v1691_v4 = vsel %vm1611_vm7, %v3551_v31, 0.0 }
 0x50f   :  { %1692 = vadd.xlane.f32.xlu0 %v1691_v4  ;;  %v1799_v4 = vsel %vm1489_vm4, %v3498_v18, %v3528_v59 }
 0x560   :  { %v1653_v29 = vpop.xlane.xlu2 %1652 }
 0x561   :  { %v1654_v10 = vcvt.f32.s32 %v1653_v29 }
 0x563   :  { %v1657_v60 = vadd.s32 %v1656_v47, %v1654_v10 }
 0x565   :  { %v1715_v2 = vperm.slane %v1657_v60, 0  ;;  %v1721_v25 = vperm.slane %v1657_v60, 1 }
 0x567   :  { %vm1716_vm10 = vcmp.eq.s32.totalorder %v3520_v62, %v1715_v2  ;;  %vm1722_vm7 = vcmp.eq.s32.totalorder %v3520_v62, %v1721_v25 }
 0x568   :  { %v1717_v15 = vsel %vm1716_vm10, %v1714_v28, %v3493_v7  ;;  %v1761_v12 = vpop.permute.xlu2 %1760 }
 0x569   :  { %v1718_v58 = vmul.f32 0.99, %v1717_v15  ;;  %v1763_v43 = vsel %vm3531_vm6, %v1758_v22, %v1761_v12 }
 0x56a   :  { %v1765_v32 = vsel %vm1753_vm8, %v1764_v40, %v1763_v43 }
 0x56b   :  { %v1720_v41 = vadd.f32 %v1719_v49, %v1718_v58 }
 0x56d   :  { %v3560_v52 = vsel %vm1722_vm7, %v1720_v41, %v1717_v15 }
 0x56e   :  { %v1724_v54 = vmul.f32 %v3560_v52, %v3560_v52 }
 0x570   :  { %v1726_v20 = vsel %vm1725_vm11, %v1724_v54, 0.0 }
 0x571   :  { %1727 = vadd.xlane.f32.xlu0 %v1726_v20 }
 0x582   :  { %v1693_v7 = vpop.xlane.xlu0 %1692 }
 0x583   :  { %2393 = vrcp.f32 %v1693_v7  ;;  %v1705_v30 = vand.u32 2147483648, %v1693_v7  ;;  %v1703_v48 = vand.u32 2147483647, %v1693_v7  ;;  %vm1699_vm13 = vweird.f32 %v1693_v7 }
 0x585   :  { %1784 = vrot.lane.b32.xlu0 %v3486_v14, %s2557_s2  ;;  %v1706_v42 = vor.u32 1.1754944e-38, %v1705_v30  ;;  %vm1704_vm15 = vcmp.eq.f32.partialorder %v1703_v48, 8.507059e+37  ;;  %v1777_v14 = vsel %vm1753_vm8, %v1776_v19, %v1775_v55  ;;  %s1809_s2 = sshll.u32 %s2562_s26, 4  ;;  %s1810_s2 = int_to_ptr.vmem [resolvable:$true] %s1809_s2 }
 0x586   :  { %1778 = vst.msk [vmem:[%s3643_s19] sm:$0xff] %vm1770_vm0, %v1777_v14 }
 0x589   :  { %v2394_v11 = vpop.eup %2393 }
 0x58a   :  { %v1695_v44 = vmul.f32 %v2394_v11, %v1693_v7  ;;  %vm1700_vm12 = vweird.f32 %v2394_v11 }
 0x58b   :  { %vm1701_vm14 = vmor %vm1699_vm13, %vm1700_vm12 }
 0x58c   :  { %v1696_v23 = vsub.f32 1.0, %v1695_v44 }
 0x58e   :  { %v1697_v26 = vmul.f32 %v2394_v11, %v1696_v23 }
 0x590   :  { %v1698_v39 = vadd.f32 %v2394_v11, %v1697_v26 }
 0x592   :  { %v1702_v33 = vsel %vm1701_vm14, %v2394_v11, %v1698_v39 }
 0x593   :  { %v1707_v35 = vsel %vm1704_vm15, %v1706_v42, %v1702_v33 }
 0x594   :  { %v1708_v45 = vmul.f32 %v3551_v31, %v1707_v35 }
 0x596   :  { %1788 = vrot.lane.b32.xlu2 %v1708_v45, %s2554_s30 }
 0x59e   :  { %1767 = vrot.lane.b32.xlu2 %v1765_v32, %s2553_s9 }
 0x5e4   :  { %v1728_v1 = vpop.xlane.xlu0 %1727 }
 0x5e5   :  { %2395 = vrsqrt.f32 %v1728_v1  ;;  %vm1736_vm3 = vcmp.eq.f32.partialorder %v1728_v1, inf  ;;  %v1739_v37 = vand.u32 2147483648, %v1728_v1  ;;  %vm1738_vm5 = vcmp.eq.f32.partialorder %v1728_v1, 0.0 }
 0x5eb   :  { %v2396_v61 = vpop.eup %2395 }
 0x5ec   :  { %v1730_v36 = vmul.f32 %v2396_v61, %v1728_v1 }
 0x5ee   :  { %v1731_v34 = vmul.f32 %v2396_v61, %v1730_v36 }
 0x5f0   :  { %v1732_v8 = vmul.f32 0.5, %v1731_v34  ;;  %v1789_v0 = vpop.permute.xlu2 %1788 }
 0x5f2   :  { %v1733_v63 = vsub.f32 1.5, %v1732_v8 }
 0x5f4   :  { %v1734_v46 = vmul.f32 %v2396_v61, %v1733_v63 }
 0x5f6   :  { %v1735_v50 = vmul.f32 %v1734_v46, %v1728_v1 }
 0x5f7   :  { %v1785_v62 = vpop.permute.xlu0 %1784 }
 0x5f8   :  { %v1791_v51 = vsel %vm1770_vm0, %v1781_v6, %v1785_v62  ;;  %v1737_v9 = vsel %vm1736_vm3, %v1728_v1, %v1735_v50  ;;  %v1768_v3 = vpop.permute.xlu2 %1767 }
 0x5f9   :  { %v1793_v57 = vsel %vm1792_vm1, %v1791_v51, %v1789_v0  ;;  %v1740_v56 = vsel %vm1738_vm5, %v1739_v37, %v1737_v9  ;;  %1771 = vst.msk [vmem:[%s3642_s18] sm:$0xff] %vm1770_vm0, %v1768_v3 }
 0x5fa   :  { %v1795_v21 = vsel %vm1794_vm2, %v1793_v57, 0.0  ;;  %v1741_v38 = vmax.f32 %v1740_v56, 1e-12 }
 0x5fb   :  { %v1797_v31 = vrot.slane %v1795_v21, 4 }
 0x5fc   :  { %2397 = vrcp.f32 %v1741_v38 }
 0x5fd   :  { %v1800_v53 = vsel %vm1725_vm11, %v1799_v4, %v1797_v31 }
 0x5fe   :  { %1801 = vst [vmem:[%s3639_s15] sm:$0x3f] %v1800_v53 }
 0x602   :  { %v2398_v17 = vpop.eup %2397 }
 0x603   :  { %v1743_v29 = vmul.f32 %v2398_v17, %v3560_v52 }
 0x605   :  { %1744 = vst [vmem:[#allocation3] sm:$0xf] %v1743_v29 }
 0x606   :  { %1814 = dma.vmem_to_hbm [thread:$0]  %s1810_s2, 64, %s1812_s6, [#allocation4]  }
 0x607   :  { %2544 = dma.done.wait [#allocation4], 64  }
 0x608   :  { %2545 = vsyncadd [#allocation4], 4294967232 }
 0x609   :  { %2546 = dma.done.wait [#allocation6], 640  }
 0x60a   :  { %2547 = vsyncadd [#allocation6], 4294966656 }
 0x60b   :  { %2548 = dma.done.wait [#allocation9], 2064  }
 0x60c   :  { %2549 = vsyncadd [#allocation9], 4294965232 }
 0x60d   :  { %2550 = dma.done.wait [#allocation12], 16  }
 0x60e   :  { %2551 = vsyncadd [#allocation12], 4294967280 }
 0x60f   :  { %1908 = vsyncpa [#allocation4], 1 }
 0x610   :  { %1909 = vsyncpa [#allocation6], 1 }
 0x611   :  { %1910 = vsyncpa [#allocation9], 1 }
 0x612   :  { %1911 = vsyncpa [#allocation12], 1 }

</bundles_post_ra>
